<compile_context>
chip_gen: v5e
topology: v5e:2x2
jax: 0.10.0
libtpu: 0.0.40
codegen_flags: <defaults>
</compile_context>

<pallas_src>
import functools

import jax
import jax.numpy as jnp
from jax.experimental import pallas as pl
from jax.experimental.pallas import tpu as pltpu  # noqa: F401  (TPU backend)


def regression_lstm_kernel(x_ref, wih1_ref, whh1_ref, b1_ref,
                           wih2_ref, b2_ref, wreg_ref, breg_ref,
                           out_ref, *, T, B):
    """Fused RegressionLSTM forward.

    x_ref   : (T*B, F)   time-major flattened input (row index = t*B + b)
    wih1    : (F, 4*H1)  LSTM1 input weights  (torch weight_ih_l0 transposed)
    whh1    : (H1, 4*H1) LSTM1 recurrent weights (torch weight_hh_l0 transposed)
    b1      : (1, 4*H1)  LSTM1 bias (b_ih + b_hh pre-summed)
    wih2    : (H1, 4*H2) LSTM2 input weights
    b2      : (1, 4*H2)  LSTM2 bias (b_ih + b_hh pre-summed)
    wreg    : (1, H2)    regression Linear weight (torch layout, untransposed)
    breg    : (1, 1)     regression Linear bias
    out_ref : (B, 1)
    """
    H1 = whh1_ref.shape[0]
    H2 = wih2_ref.shape[1] // 4

    # ---- LSTM1: input projection hoisted out of the recurrence -------------
    # One MXU matmul over all T*B rows; bias folded in here, not per step.
    xw = (jnp.dot(x_ref[...], wih1_ref[...],
                  preferred_element_type=jnp.float32)
          + b1_ref[...])                                    # (T*B, 4*H1)

    whh1 = whh1_ref[...]                                    # (H1, 4*H1)

    h = jnp.zeros((B, H1), jnp.float32)
    c = jnp.zeros((B, H1), jnp.float32)

    # Fully static unroll; only h @ W_hh remains on the serial chain.
    for t in range(T):
        gates = xw[t * B:(t + 1) * B, :] + jnp.dot(
            h, whh1, preferred_element_type=jnp.float32)    # (B, 4*H1)
        # Full-lane activations (2 EUP passes), then slice per gate (i,f,g,o).
        sig = jax.nn.sigmoid(gates)
        tnh = jnp.tanh(gates)
        i = sig[:, 0 * H1:1 * H1]
        f = sig[:, 1 * H1:2 * H1]
        g = tnh[:, 2 * H1:3 * H1]
        o = sig[:, 3 * H1:4 * H1]
        c = f * c + i * g
        h = o * jnp.tanh(c)                                 # (B, H1)

    # ---- LSTM2: single step on out1[:, -1, :] from zero initial state ------
    # h0 = c0 = 0  =>  the W_hh2 term and the forget-gate term vanish exactly.
    gates2 = (jnp.dot(h, wih2_ref[...], preferred_element_type=jnp.float32)
              + b2_ref[...])                                # (B, 4*H2)
    sig2 = jax.nn.sigmoid(gates2)
    tnh2 = jnp.tanh(gates2)
    i2 = sig2[:, 0 * H2:1 * H2]
    g2 = tnh2[:, 2 * H2:3 * H2]
    o2 = sig2[:, 3 * H2:4 * H2]
    h2 = o2 * jnp.tanh(i2 * g2)                             # (B, H2)

    # ---- Dropout = identity (eval); regression head -------------------------
    # (B,H2) * (1,H2) -> lane reduce: avoids an N=1 MXU matmul + 1-lane store
    # from a matmul result band.
    out_ref[...] = (jnp.sum(h2 * wreg_ref[...], axis=-1, keepdims=True)
                    + breg_ref[...])                        # (B, 1)


# ----------------------------------------------------------------------------
# Wrapper
# ----------------------------------------------------------------------------
def regression_lstm_forward(params, x):
    """x: (B, T, input_size) float32  ->  (B,) regression output."""
    B, T, F_in = x.shape
    # Time-major flatten so each per-step slice inside the kernel is a
    # contiguous leading-dim window (row index = t*B + b).
    x_tb = jnp.transpose(x, (1, 0, 2)).reshape(T * B, F_in)
    kernel = functools.partial(regression_lstm_kernel, T=T, B=B)
    out = pl.pallas_call(
        kernel,
        out_shape=jax.ShapeDtypeStruct((B, 1), jnp.float32),
    )(x_tb, params["wih1"], params["whh1"], params["b1"],
      params["wih2"], params["b2"], params["w_reg"], params["b_reg"])
    return out[:, 0]


# ----------------------------------------------------------------------------
# Deterministic synthetic parameters (torch-style uniform init)
# ----------------------------------------------------------------------------
def init_params(key, *, input_size, hidden_size_1, hidden_size_2):
    """Torch layouts are transposed for right-multiplication; the two LSTM
    biases (b_ih, b_hh) are pre-summed.  LSTM2's weight_hh is mathematically
    unused by this forward pass (single step from a zero hidden state), so it
    is not materialised."""
    F_in, H1, H2 = input_size, hidden_size_1, hidden_size_2
    ks = jax.random.split(key, 9)

    def u(k, shape, scale):
        return jax.random.uniform(k, shape, jnp.float32, -scale, scale)

    s1 = 1.0 / (H1 ** 0.5)
    s2 = 1.0 / (H2 ** 0.5)
    return {
        "wih1": u(ks[0], (F_in, 4 * H1), s1),
        "whh1": u(ks[1], (H1, 4 * H1), s1),
        "b1":   u(ks[2], (1, 4 * H1), s1) + u(ks[3], (1, 4 * H1), s1),
        "wih2": u(ks[4], (H1, 4 * H2), s2),
        "b2":   u(ks[5], (1, 4 * H2), s2) + u(ks[6], (1, 4 * H2), s2),
        "w_reg": u(ks[7], (1, H2), s2),
        "b_reg": u(ks[8], (1, 1), s2),
    }


# ----------------------------------------------------------------------------
if __name__ == "__main__":
    B, T = 2, 16
    INPUT_SIZE, HIDDEN_1, HIDDEN_2 = 8, 32, 32   # 4*H = 128 -> lane-dense gates

    key = jax.random.PRNGKey(0)
    k_x, k_p = jax.random.split(key)
    x = jax.random.normal(k_x, (B, T, INPUT_SIZE), jnp.float32)
    params = init_params(k_p, input_size=INPUT_SIZE,
                         hidden_size_1=HIDDEN_1, hidden_size_2=HIDDEN_2)

    reg_out = regression_lstm_forward(params, x)
    jax.block_until_ready(reg_out)

    assert reg_out.shape == (B,)
    assert bool(jnp.all(jnp.isfinite(reg_out)))
    print("KERNEL_OK")
</pallas_src>

<mosaic_0001>
module attributes {stable_mosaic.version = 11 : i64} {
  func.func @regression_lstm_kernel(%arg0: memref<32x8xf32, #tpu.memory_space<vmem>>, %arg1: memref<8x128xf32, #tpu.memory_space<vmem>>, %arg2: memref<32x128xf32, #tpu.memory_space<vmem>>, %arg3: memref<1x128xf32, #tpu.memory_space<vmem>>, %arg4: memref<32x128xf32, #tpu.memory_space<vmem>>, %arg5: memref<1x128xf32, #tpu.memory_space<vmem>>, %arg6: memref<1x32xf32, #tpu.memory_space<vmem>>, %arg7: memref<1x1xf32, #tpu.memory_space<vmem>>, %arg8: memref<2x1xf32, #tpu.memory_space<vmem>>) attributes {dimension_semantics = [], scalar_prefetch = 0 : i64, scratch_operands = 0 : i64, tpu.core_type = #tpu.core_type<tc>} {
    %c0 = arith.constant 0 : index
    %c0_0 = arith.constant 0 : index
    %0 = vector.load %arg0[%c0, %c0_0] : memref<32x8xf32, #tpu.memory_space<vmem>>, vector<32x8xf32>
    %c0_1 = arith.constant 0 : index
    %c0_2 = arith.constant 0 : index
    %1 = vector.load %arg1[%c0_1, %c0_2] : memref<8x128xf32, #tpu.memory_space<vmem>>, vector<8x128xf32>
    %cst = arith.constant dense<0.000000e+00> : vector<32x128xf32>
    %2 = tpu.matmul %0, %1, %cst {dimension_numbers = #tpu.dot_dimension_numbers<[1], [0], [0], [1], [0, 0, 1, 1], [], []>} : vector<32x8xf32>, vector<8x128xf32>, vector<32x128xf32> -> vector<32x128xf32>
    %c0_3 = arith.constant 0 : index
    %c0_4 = arith.constant 0 : index
    %3 = vector.load %arg3[%c0_3, %c0_4] : memref<1x128xf32, #tpu.memory_space<vmem>>, vector<1x128xf32>
    %4 = vector.broadcast %3 : vector<1x128xf32> to vector<32x128xf32>
    %5 = arith.addf %2, %4 : vector<32x128xf32>
    %c0_5 = arith.constant 0 : index
    %c0_6 = arith.constant 0 : index
    %6 = vector.load %arg2[%c0_5, %c0_6] : memref<32x128xf32, #tpu.memory_space<vmem>>, vector<32x128xf32>
    %cst_7 = arith.constant 0.000000e+00 : f32
    %7 = vector.broadcast %cst_7 : f32 to vector<2x32xf32>
    %cst_8 = arith.constant 0.000000e+00 : f32
    %8 = vector.broadcast %cst_8 : f32 to vector<2x32xf32>
    %9 = vector.extract_strided_slice %5 {offsets = [0, 0], sizes = [2, 128], strides = [1, 1]} : vector<32x128xf32> to vector<2x128xf32>
    %cst_9 = arith.constant dense<0.000000e+00> : vector<2x128xf32>
    %10 = tpu.matmul %7, %6, %cst_9 {dimension_numbers = #tpu.dot_dimension_numbers<[1], [0], [0], [1], [0, 0, 1, 1], [], []>} : vector<2x32xf32>, vector<32x128xf32>, vector<2x128xf32> -> vector<2x128xf32>
    %11 = arith.addf %9, %10 : vector<2x128xf32>
    %12 = arith.negf %11 : vector<2x128xf32>
    %13 = math.exp %12 : vector<2x128xf32>
    %cst_10 = arith.constant 1.000000e+00 : f32
    %14 = vector.broadcast %cst_10 : f32 to vector<2x128xf32>
    %15 = arith.addf %14, %13 : vector<2x128xf32>
    %16 = arith.divf %14, %15 : vector<2x128xf32>
    %17 = math.tanh %11 : vector<2x128xf32>
    %18 = vector.extract_strided_slice %16 {offsets = [0, 0], sizes = [2, 32], strides = [1, 1]} : vector<2x128xf32> to vector<2x32xf32>
    %19 = vector.extract_strided_slice %16 {offsets = [0, 32], sizes = [2, 32], strides = [1, 1]} : vector<2x128xf32> to vector<2x32xf32>
    %20 = vector.extract_strided_slice %17 {offsets = [0, 64], sizes = [2, 32], strides = [1, 1]} : vector<2x128xf32> to vector<2x32xf32>
    %21 = vector.extract_strided_slice %16 {offsets = [0, 96], sizes = [2, 32], strides = [1, 1]} : vector<2x128xf32> to vector<2x32xf32>
    %22 = arith.mulf %19, %8 : vector<2x32xf32>
    %23 = arith.mulf %18, %20 : vector<2x32xf32>
    %24 = arith.addf %22, %23 : vector<2x32xf32>
    %25 = math.tanh %24 : vector<2x32xf32>
    %26 = arith.mulf %21, %25 : vector<2x32xf32>
    %27 = vector.extract_strided_slice %5 {offsets = [2, 0], sizes = [2, 128], strides = [1, 1]} : vector<32x128xf32> to vector<2x128xf32>
    %cst_11 = arith.constant dense<0.000000e+00> : vector<2x128xf32>
    %28 = tpu.matmul %26, %6, %cst_11 {dimension_numbers = #tpu.dot_dimension_numbers<[1], [0], [0], [1], [0, 0, 1, 1], [], []>} : vector<2x32xf32>, vector<32x128xf32>, vector<2x128xf32> -> vector<2x128xf32>
    %29 = arith.addf %27, %28 : vector<2x128xf32>
    %30 = arith.negf %29 : vector<2x128xf32>
    %31 = math.exp %30 : vector<2x128xf32>
    %cst_12 = arith.constant 1.000000e+00 : f32
    %32 = vector.broadcast %cst_12 : f32 to vector<2x128xf32>
    %33 = arith.addf %32, %31 : vector<2x128xf32>
    %34 = arith.divf %32, %33 : vector<2x128xf32>
    %35 = math.tanh %29 : vector<2x128xf32>
    %36 = vector.extract_strided_slice %34 {offsets = [0, 0], sizes = [2, 32], strides = [1, 1]} : vector<2x128xf32> to vector<2x32xf32>
    %37 = vector.extract_strided_slice %34 {offsets = [0, 32], sizes = [2, 32], strides = [1, 1]} : vector<2x128xf32> to vector<2x32xf32>
    %38 = vector.extract_strided_slice %35 {offsets = [0, 64], sizes = [2, 32], strides = [1, 1]} : vector<2x128xf32> to vector<2x32xf32>
    %39 = vector.extract_strided_slice %34 {offsets = [0, 96], sizes = [2, 32], strides = [1, 1]} : vector<2x128xf32> to vector<2x32xf32>
    %40 = arith.mulf %37, %24 : vector<2x32xf32>
    %41 = arith.mulf %36, %38 : vector<2x32xf32>
    %42 = arith.addf %40, %41 : vector<2x32xf32>
    %43 = math.tanh %42 : vector<2x32xf32>
    %44 = arith.mulf %39, %43 : vector<2x32xf32>
    %45 = vector.extract_strided_slice %5 {offsets = [4, 0], sizes = [2, 128], strides = [1, 1]} : vector<32x128xf32> to vector<2x128xf32>
    %cst_13 = arith.constant dense<0.000000e+00> : vector<2x128xf32>
    %46 = tpu.matmul %44, %6, %cst_13 {dimension_numbers = #tpu.dot_dimension_numbers<[1], [0], [0], [1], [0, 0, 1, 1], [], []>} : vector<2x32xf32>, vector<32x128xf32>, vector<2x128xf32> -> vector<2x128xf32>
    %47 = arith.addf %45, %46 : vector<2x128xf32>
    %48 = arith.negf %47 : vector<2x128xf32>
    %49 = math.exp %48 : vector<2x128xf32>
    %cst_14 = arith.constant 1.000000e+00 : f32
    %50 = vector.broadcast %cst_14 : f32 to vector<2x128xf32>
    %51 = arith.addf %50, %49 : vector<2x128xf32>
    %52 = arith.divf %50, %51 : vector<2x128xf32>
    %53 = math.tanh %47 : vector<2x128xf32>
    %54 = vector.extract_strided_slice %52 {offsets = [0, 0], sizes = [2, 32], strides = [1, 1]} : vector<2x128xf32> to vector<2x32xf32>
    %55 = vector.extract_strided_slice %52 {offsets = [0, 32], sizes = [2, 32], strides = [1, 1]} : vector<2x128xf32> to vector<2x32xf32>
    %56 = vector.extract_strided_slice %53 {offsets = [0, 64], sizes = [2, 32], strides = [1, 1]} : vector<2x128xf32> to vector<2x32xf32>
    %57 = vector.extract_strided_slice %52 {offsets = [0, 96], sizes = [2, 32], strides = [1, 1]} : vector<2x128xf32> to vector<2x32xf32>
    %58 = arith.mulf %55, %42 : vector<2x32xf32>
    %59 = arith.mulf %54, %56 : vector<2x32xf32>
    %60 = arith.addf %58, %59 : vector<2x32xf32>
    %61 = math.tanh %60 : vector<2x32xf32>
    %62 = arith.mulf %57, %61 : vector<2x32xf32>
    %63 = vector.extract_strided_slice %5 {offsets = [6, 0], sizes = [2, 128], strides = [1, 1]} : vector<32x128xf32> to vector<2x128xf32>
    %cst_15 = arith.constant dense<0.000000e+00> : vector<2x128xf32>
    %64 = tpu.matmul %62, %6, %cst_15 {dimension_numbers = #tpu.dot_dimension_numbers<[1], [0], [0], [1], [0, 0, 1, 1], [], []>} : vector<2x32xf32>, vector<32x128xf32>, vector<2x128xf32> -> vector<2x128xf32>
    %65 = arith.addf %63, %64 : vector<2x128xf32>
    %66 = arith.negf %65 : vector<2x128xf32>
    %67 = math.exp %66 : vector<2x128xf32>
    %cst_16 = arith.constant 1.000000e+00 : f32
    %68 = vector.broadcast %cst_16 : f32 to vector<2x128xf32>
    %69 = arith.addf %68, %67 : vector<2x128xf32>
    %70 = arith.divf %68, %69 : vector<2x128xf32>
    %71 = math.tanh %65 : vector<2x128xf32>
    %72 = vector.extract_strided_slice %70 {offsets = [0, 0], sizes = [2, 32], strides = [1, 1]} : vector<2x128xf32> to vector<2x32xf32>
    %73 = vector.extract_strided_slice %70 {offsets = [0, 32], sizes = [2, 32], strides = [1, 1]} : vector<2x128xf32> to vector<2x32xf32>
    %74 = vector.extract_strided_slice %71 {offsets = [0, 64], sizes = [2, 32], strides = [1, 1]} : vector<2x128xf32> to vector<2x32xf32>
    %75 = vector.extract_strided_slice %70 {offsets = [0, 96], sizes = [2, 32], strides = [1, 1]} : vector<2x128xf32> to vector<2x32xf32>
    %76 = arith.mulf %73, %60 : vector<2x32xf32>
    %77 = arith.mulf %72, %74 : vector<2x32xf32>
    %78 = arith.addf %76, %77 : vector<2x32xf32>
    %79 = math.tanh %78 : vector<2x32xf32>
    %80 = arith.mulf %75, %79 : vector<2x32xf32>
    %81 = vector.extract_strided_slice %5 {offsets = [8, 0], sizes = [2, 128], strides = [1, 1]} : vector<32x128xf32> to vector<2x128xf32>
    %cst_17 = arith.constant dense<0.000000e+00> : vector<2x128xf32>
    %82 = tpu.matmul %80, %6, %cst_17 {dimension_numbers = #tpu.dot_dimension_numbers<[1], [0], [0], [1], [0, 0, 1, 1], [], []>} : vector<2x32xf32>, vector<32x128xf32>, vector<2x128xf32> -> vector<2x128xf32>
    %83 = arith.addf %81, %82 : vector<2x128xf32>
    %84 = arith.negf %83 : vector<2x128xf32>
    %85 = math.exp %84 : vector<2x128xf32>
    %cst_18 = arith.constant 1.000000e+00 : f32
    %86 = vector.broadcast %cst_18 : f32 to vector<2x128xf32>
    %87 = arith.addf %86, %85 : vector<2x128xf32>
    %88 = arith.divf %86, %87 : vector<2x128xf32>
    %89 = math.tanh %83 : vector<2x128xf32>
    %90 = vector.extract_strided_slice %88 {offsets = [0, 0], sizes = [2, 32], strides = [1, 1]} : vector<2x128xf32> to vector<2x32xf32>
    %91 = vector.extract_strided_slice %88 {offsets = [0, 32], sizes = [2, 32], strides = [1, 1]} : vector<2x128xf32> to vector<2x32xf32>
    %92 = vector.extract_strided_slice %89 {offsets = [0, 64], sizes = [2, 32], strides = [1, 1]} : vector<2x128xf32> to vector<2x32xf32>
    %93 = vector.extract_strided_slice %88 {offsets = [0, 96], sizes = [2, 32], strides = [1, 1]} : vector<2x128xf32> to vector<2x32xf32>
    %94 = arith.mulf %91, %78 : vector<2x32xf32>
    %95 = arith.mulf %90, %92 : vector<2x32xf32>
    %96 = arith.addf %94, %95 : vector<2x32xf32>
    %97 = math.tanh %96 : vector<2x32xf32>
    %98 = arith.mulf %93, %97 : vector<2x32xf32>
    %99 = vector.extract_strided_slice %5 {offsets = [10, 0], sizes = [2, 128], strides = [1, 1]} : vector<32x128xf32> to vector<2x128xf32>
    %cst_19 = arith.constant dense<0.000000e+00> : vector<2x128xf32>
    %100 = tpu.matmul %98, %6, %cst_19 {dimension_numbers = #tpu.dot_dimension_numbers<[1], [0], [0], [1], [0, 0, 1, 1], [], []>} : vector<2x32xf32>, vector<32x128xf32>, vector<2x128xf32> -> vector<2x128xf32>
    %101 = arith.addf %99, %100 : vector<2x128xf32>
    %102 = arith.negf %101 : vector<2x128xf32>
    %103 = math.exp %102 : vector<2x128xf32>
    %cst_20 = arith.constant 1.000000e+00 : f32
    %104 = vector.broadcast %cst_20 : f32 to vector<2x128xf32>
    %105 = arith.addf %104, %103 : vector<2x128xf32>
    %106 = arith.divf %104, %105 : vector<2x128xf32>
    %107 = math.tanh %101 : vector<2x128xf32>
    %108 = vector.extract_strided_slice %106 {offsets = [0, 0], sizes = [2, 32], strides = [1, 1]} : vector<2x128xf32> to vector<2x32xf32>
    %109 = vector.extract_strided_slice %106 {offsets = [0, 32], sizes = [2, 32], strides = [1, 1]} : vector<2x128xf32> to vector<2x32xf32>
    %110 = vector.extract_strided_slice %107 {offsets = [0, 64], sizes = [2, 32], strides = [1, 1]} : vector<2x128xf32> to vector<2x32xf32>
    %111 = vector.extract_strided_slice %106 {offsets = [0, 96], sizes = [2, 32], strides = [1, 1]} : vector<2x128xf32> to vector<2x32xf32>
    %112 = arith.mulf %109, %96 : vector<2x32xf32>
    %113 = arith.mulf %108, %110 : vector<2x32xf32>
    %114 = arith.addf %112, %113 : vector<2x32xf32>
    %115 = math.tanh %114 : vector<2x32xf32>
    %116 = arith.mulf %111, %115 : vector<2x32xf32>
    %117 = vector.extract_strided_slice %5 {offsets = [12, 0], sizes = [2, 128], strides = [1, 1]} : vector<32x128xf32> to vector<2x128xf32>
    %cst_21 = arith.constant dense<0.000000e+00> : vector<2x128xf32>
    %118 = tpu.matmul %116, %6, %cst_21 {dimension_numbers = #tpu.dot_dimension_numbers<[1], [0], [0], [1], [0, 0, 1, 1], [], []>} : vector<2x32xf32>, vector<32x128xf32>, vector<2x128xf32> -> vector<2x128xf32>
    %119 = arith.addf %117, %118 : vector<2x128xf32>
    %120 = arith.negf %119 : vector<2x128xf32>
    %121 = math.exp %120 : vector<2x128xf32>
    %cst_22 = arith.constant 1.000000e+00 : f32
    %122 = vector.broadcast %cst_22 : f32 to vector<2x128xf32>
    %123 = arith.addf %122, %121 : vector<2x128xf32>
    %124 = arith.divf %122, %123 : vector<2x128xf32>
    %125 = math.tanh %119 : vector<2x128xf32>
    %126 = vector.extract_strided_slice %124 {offsets = [0, 0], sizes = [2, 32], strides = [1, 1]} : vector<2x128xf32> to vector<2x32xf32>
    %127 = vector.extract_strided_slice %124 {offsets = [0, 32], sizes = [2, 32], strides = [1, 1]} : vector<2x128xf32> to vector<2x32xf32>
    %128 = vector.extract_strided_slice %125 {offsets = [0, 64], sizes = [2, 32], strides = [1, 1]} : vector<2x128xf32> to vector<2x32xf32>
    %129 = vector.extract_strided_slice %124 {offsets = [0, 96], sizes = [2, 32], strides = [1, 1]} : vector<2x128xf32> to vector<2x32xf32>
    %130 = arith.mulf %127, %114 : vector<2x32xf32>
    %131 = arith.mulf %126, %128 : vector<2x32xf32>
    %132 = arith.addf %130, %131 : vector<2x32xf32>
    %133 = math.tanh %132 : vector<2x32xf32>
    %134 = arith.mulf %129, %133 : vector<2x32xf32>
    %135 = vector.extract_strided_slice %5 {offsets = [14, 0], sizes = [2, 128], strides = [1, 1]} : vector<32x128xf32> to vector<2x128xf32>
    %cst_23 = arith.constant dense<0.000000e+00> : vector<2x128xf32>
    %136 = tpu.matmul %134, %6, %cst_23 {dimension_numbers = #tpu.dot_dimension_numbers<[1], [0], [0], [1], [0, 0, 1, 1], [], []>} : vector<2x32xf32>, vector<32x128xf32>, vector<2x128xf32> -> vector<2x128xf32>
    %137 = arith.addf %135, %136 : vector<2x128xf32>
    %138 = arith.negf %137 : vector<2x128xf32>
    %139 = math.exp %138 : vector<2x128xf32>
    %cst_24 = arith.constant 1.000000e+00 : f32
    %140 = vector.broadcast %cst_24 : f32 to vector<2x128xf32>
    %141 = arith.addf %140, %139 : vector<2x128xf32>
    %142 = arith.divf %140, %141 : vector<2x128xf32>
    %143 = math.tanh %137 : vector<2x128xf32>
    %144 = vector.extract_strided_slice %142 {offsets = [0, 0], sizes = [2, 32], strides = [1, 1]} : vector<2x128xf32> to vector<2x32xf32>
    %145 = vector.extract_strided_slice %142 {offsets = [0, 32], sizes = [2, 32], strides = [1, 1]} : vector<2x128xf32> to vector<2x32xf32>
    %146 = vector.extract_strided_slice %143 {offsets = [0, 64], sizes = [2, 32], strides = [1, 1]} : vector<2x128xf32> to vector<2x32xf32>
    %147 = vector.extract_strided_slice %142 {offsets = [0, 96], sizes = [2, 32], strides = [1, 1]} : vector<2x128xf32> to vector<2x32xf32>
    %148 = arith.mulf %145, %132 : vector<2x32xf32>
    %149 = arith.mulf %144, %146 : vector<2x32xf32>
    %150 = arith.addf %148, %149 : vector<2x32xf32>
    %151 = math.tanh %150 : vector<2x32xf32>
    %152 = arith.mulf %147, %151 : vector<2x32xf32>
    %153 = vector.extract_strided_slice %5 {offsets = [16, 0], sizes = [2, 128], strides = [1, 1]} : vector<32x128xf32> to vector<2x128xf32>
    %cst_25 = arith.constant dense<0.000000e+00> : vector<2x128xf32>
    %154 = tpu.matmul %152, %6, %cst_25 {dimension_numbers = #tpu.dot_dimension_numbers<[1], [0], [0], [1], [0, 0, 1, 1], [], []>} : vector<2x32xf32>, vector<32x128xf32>, vector<2x128xf32> -> vector<2x128xf32>
    %155 = arith.addf %153, %154 : vector<2x128xf32>
    %156 = arith.negf %155 : vector<2x128xf32>
    %157 = math.exp %156 : vector<2x128xf32>
    %cst_26 = arith.constant 1.000000e+00 : f32
    %158 = vector.broadcast %cst_26 : f32 to vector<2x128xf32>
    %159 = arith.addf %158, %157 : vector<2x128xf32>
    %160 = arith.divf %158, %159 : vector<2x128xf32>
    %161 = math.tanh %155 : vector<2x128xf32>
    %162 = vector.extract_strided_slice %160 {offsets = [0, 0], sizes = [2, 32], strides = [1, 1]} : vector<2x128xf32> to vector<2x32xf32>
    %163 = vector.extract_strided_slice %160 {offsets = [0, 32], sizes = [2, 32], strides = [1, 1]} : vector<2x128xf32> to vector<2x32xf32>
    %164 = vector.extract_strided_slice %161 {offsets = [0, 64], sizes = [2, 32], strides = [1, 1]} : vector<2x128xf32> to vector<2x32xf32>
    %165 = vector.extract_strided_slice %160 {offsets = [0, 96], sizes = [2, 32], strides = [1, 1]} : vector<2x128xf32> to vector<2x32xf32>
    %166 = arith.mulf %163, %150 : vector<2x32xf32>
    %167 = arith.mulf %162, %164 : vector<2x32xf32>
    %168 = arith.addf %166, %167 : vector<2x32xf32>
    %169 = math.tanh %168 : vector<2x32xf32>
    %170 = arith.mulf %165, %169 : vector<2x32xf32>
    %171 = vector.extract_strided_slice %5 {offsets = [18, 0], sizes = [2, 128], strides = [1, 1]} : vector<32x128xf32> to vector<2x128xf32>
    %cst_27 = arith.constant dense<0.000000e+00> : vector<2x128xf32>
    %172 = tpu.matmul %170, %6, %cst_27 {dimension_numbers = #tpu.dot_dimension_numbers<[1], [0], [0], [1], [0, 0, 1, 1], [], []>} : vector<2x32xf32>, vector<32x128xf32>, vector<2x128xf32> -> vector<2x128xf32>
    %173 = arith.addf %171, %172 : vector<2x128xf32>
    %174 = arith.negf %173 : vector<2x128xf32>
    %175 = math.exp %174 : vector<2x128xf32>
    %cst_28 = arith.constant 1.000000e+00 : f32
    %176 = vector.broadcast %cst_28 : f32 to vector<2x128xf32>
    %177 = arith.addf %176, %175 : vector<2x128xf32>
    %178 = arith.divf %176, %177 : vector<2x128xf32>
    %179 = math.tanh %173 : vector<2x128xf32>
    %180 = vector.extract_strided_slice %178 {offsets = [0, 0], sizes = [2, 32], strides = [1, 1]} : vector<2x128xf32> to vector<2x32xf32>
    %181 = vector.extract_strided_slice %178 {offsets = [0, 32], sizes = [2, 32], strides = [1, 1]} : vector<2x128xf32> to vector<2x32xf32>
    %182 = vector.extract_strided_slice %179 {offsets = [0, 64], sizes = [2, 32], strides = [1, 1]} : vector<2x128xf32> to vector<2x32xf32>
    %183 = vector.extract_strided_slice %178 {offsets = [0, 96], sizes = [2, 32], strides = [1, 1]} : vector<2x128xf32> to vector<2x32xf32>
    %184 = arith.mulf %181, %168 : vector<2x32xf32>
    %185 = arith.mulf %180, %182 : vector<2x32xf32>
    %186 = arith.addf %184, %185 : vector<2x32xf32>
    %187 = math.tanh %186 : vector<2x32xf32>
    %188 = arith.mulf %183, %187 : vector<2x32xf32>
    %189 = vector.extract_strided_slice %5 {offsets = [20, 0], sizes = [2, 128], strides = [1, 1]} : vector<32x128xf32> to vector<2x128xf32>
    %cst_29 = arith.constant dense<0.000000e+00> : vector<2x128xf32>
    %190 = tpu.matmul %188, %6, %cst_29 {dimension_numbers = #tpu.dot_dimension_numbers<[1], [0], [0], [1], [0, 0, 1, 1], [], []>} : vector<2x32xf32>, vector<32x128xf32>, vector<2x128xf32> -> vector<2x128xf32>
    %191 = arith.addf %189, %190 : vector<2x128xf32>
    %192 = arith.negf %191 : vector<2x128xf32>
    %193 = math.exp %192 : vector<2x128xf32>
    %cst_30 = arith.constant 1.000000e+00 : f32
    %194 = vector.broadcast %cst_30 : f32 to vector<2x128xf32>
    %195 = arith.addf %194, %193 : vector<2x128xf32>
    %196 = arith.divf %194, %195 : vector<2x128xf32>
    %197 = math.tanh %191 : vector<2x128xf32>
    %198 = vector.extract_strided_slice %196 {offsets = [0, 0], sizes = [2, 32], strides = [1, 1]} : vector<2x128xf32> to vector<2x32xf32>
    %199 = vector.extract_strided_slice %196 {offsets = [0, 32], sizes = [2, 32], strides = [1, 1]} : vector<2x128xf32> to vector<2x32xf32>
    %200 = vector.extract_strided_slice %197 {offsets = [0, 64], sizes = [2, 32], strides = [1, 1]} : vector<2x128xf32> to vector<2x32xf32>
    %201 = vector.extract_strided_slice %196 {offsets = [0, 96], sizes = [2, 32], strides = [1, 1]} : vector<2x128xf32> to vector<2x32xf32>
    %202 = arith.mulf %199, %186 : vector<2x32xf32>
    %203 = arith.mulf %198, %200 : vector<2x32xf32>
    %204 = arith.addf %202, %203 : vector<2x32xf32>
    %205 = math.tanh %204 : vector<2x32xf32>
    %206 = arith.mulf %201, %205 : vector<2x32xf32>
    %207 = vector.extract_strided_slice %5 {offsets = [22, 0], sizes = [2, 128], strides = [1, 1]} : vector<32x128xf32> to vector<2x128xf32>
    %cst_31 = arith.constant dense<0.000000e+00> : vector<2x128xf32>
    %208 = tpu.matmul %206, %6, %cst_31 {dimension_numbers = #tpu.dot_dimension_numbers<[1], [0], [0], [1], [0, 0, 1, 1], [], []>} : vector<2x32xf32>, vector<32x128xf32>, vector<2x128xf32> -> vector<2x128xf32>
    %209 = arith.addf %207, %208 : vector<2x128xf32>
    %210 = arith.negf %209 : vector<2x128xf32>
    %211 = math.exp %210 : vector<2x128xf32>
    %cst_32 = arith.constant 1.000000e+00 : f32
    %212 = vector.broadcast %cst_32 : f32 to vector<2x128xf32>
    %213 = arith.addf %212, %211 : vector<2x128xf32>
    %214 = arith.divf %212, %213 : vector<2x128xf32>
    %215 = math.tanh %209 : vector<2x128xf32>
    %216 = vector.extract_strided_slice %214 {offsets = [0, 0], sizes = [2, 32], strides = [1, 1]} : vector<2x128xf32> to vector<2x32xf32>
    %217 = vector.extract_strided_slice %214 {offsets = [0, 32], sizes = [2, 32], strides = [1, 1]} : vector<2x128xf32> to vector<2x32xf32>
    %218 = vector.extract_strided_slice %215 {offsets = [0, 64], sizes = [2, 32], strides = [1, 1]} : vector<2x128xf32> to vector<2x32xf32>
    %219 = vector.extract_strided_slice %214 {offsets = [0, 96], sizes = [2, 32], strides = [1, 1]} : vector<2x128xf32> to vector<2x32xf32>
    %220 = arith.mulf %217, %204 : vector<2x32xf32>
    %221 = arith.mulf %216, %218 : vector<2x32xf32>
    %222 = arith.addf %220, %221 : vector<2x32xf32>
    %223 = math.tanh %222 : vector<2x32xf32>
    %224 = arith.mulf %219, %223 : vector<2x32xf32>
    %225 = vector.extract_strided_slice %5 {offsets = [24, 0], sizes = [2, 128], strides = [1, 1]} : vector<32x128xf32> to vector<2x128xf32>
    %cst_33 = arith.constant dense<0.000000e+00> : vector<2x128xf32>
    %226 = tpu.matmul %224, %6, %cst_33 {dimension_numbers = #tpu.dot_dimension_numbers<[1], [0], [0], [1], [0, 0, 1, 1], [], []>} : vector<2x32xf32>, vector<32x128xf32>, vector<2x128xf32> -> vector<2x128xf32>
    %227 = arith.addf %225, %226 : vector<2x128xf32>
    %228 = arith.negf %227 : vector<2x128xf32>
    %229 = math.exp %228 : vector<2x128xf32>
    %cst_34 = arith.constant 1.000000e+00 : f32
    %230 = vector.broadcast %cst_34 : f32 to vector<2x128xf32>
    %231 = arith.addf %230, %229 : vector<2x128xf32>
    %232 = arith.divf %230, %231 : vector<2x128xf32>
    %233 = math.tanh %227 : vector<2x128xf32>
    %234 = vector.extract_strided_slice %232 {offsets = [0, 0], sizes = [2, 32], strides = [1, 1]} : vector<2x128xf32> to vector<2x32xf32>
    %235 = vector.extract_strided_slice %232 {offsets = [0, 32], sizes = [2, 32], strides = [1, 1]} : vector<2x128xf32> to vector<2x32xf32>
    %236 = vector.extract_strided_slice %233 {offsets = [0, 64], sizes = [2, 32], strides = [1, 1]} : vector<2x128xf32> to vector<2x32xf32>
    %237 = vector.extract_strided_slice %232 {offsets = [0, 96], sizes = [2, 32], strides = [1, 1]} : vector<2x128xf32> to vector<2x32xf32>
    %238 = arith.mulf %235, %222 : vector<2x32xf32>
    %239 = arith.mulf %234, %236 : vector<2x32xf32>
    %240 = arith.addf %238, %239 : vector<2x32xf32>
    %241 = math.tanh %240 : vector<2x32xf32>
    %242 = arith.mulf %237, %241 : vector<2x32xf32>
    %243 = vector.extract_strided_slice %5 {offsets = [26, 0], sizes = [2, 128], strides = [1, 1]} : vector<32x128xf32> to vector<2x128xf32>
    %cst_35 = arith.constant dense<0.000000e+00> : vector<2x128xf32>
    %244 = tpu.matmul %242, %6, %cst_35 {dimension_numbers = #tpu.dot_dimension_numbers<[1], [0], [0], [1], [0, 0, 1, 1], [], []>} : vector<2x32xf32>, vector<32x128xf32>, vector<2x128xf32> -> vector<2x128xf32>
    %245 = arith.addf %243, %244 : vector<2x128xf32>
    %246 = arith.negf %245 : vector<2x128xf32>
    %247 = math.exp %246 : vector<2x128xf32>
    %cst_36 = arith.constant 1.000000e+00 : f32
    %248 = vector.broadcast %cst_36 : f32 to vector<2x128xf32>
    %249 = arith.addf %248, %247 : vector<2x128xf32>
    %250 = arith.divf %248, %249 : vector<2x128xf32>
    %251 = math.tanh %245 : vector<2x128xf32>
    %252 = vector.extract_strided_slice %250 {offsets = [0, 0], sizes = [2, 32], strides = [1, 1]} : vector<2x128xf32> to vector<2x32xf32>
    %253 = vector.extract_strided_slice %250 {offsets = [0, 32], sizes = [2, 32], strides = [1, 1]} : vector<2x128xf32> to vector<2x32xf32>
    %254 = vector.extract_strided_slice %251 {offsets = [0, 64], sizes = [2, 32], strides = [1, 1]} : vector<2x128xf32> to vector<2x32xf32>
    %255 = vector.extract_strided_slice %250 {offsets = [0, 96], sizes = [2, 32], strides = [1, 1]} : vector<2x128xf32> to vector<2x32xf32>
    %256 = arith.mulf %253, %240 : vector<2x32xf32>
    %257 = arith.mulf %252, %254 : vector<2x32xf32>
    %258 = arith.addf %256, %257 : vector<2x32xf32>
    %259 = math.tanh %258 : vector<2x32xf32>
    %260 = arith.mulf %255, %259 : vector<2x32xf32>
    %261 = vector.extract_strided_slice %5 {offsets = [28, 0], sizes = [2, 128], strides = [1, 1]} : vector<32x128xf32> to vector<2x128xf32>
    %cst_37 = arith.constant dense<0.000000e+00> : vector<2x128xf32>
    %262 = tpu.matmul %260, %6, %cst_37 {dimension_numbers = #tpu.dot_dimension_numbers<[1], [0], [0], [1], [0, 0, 1, 1], [], []>} : vector<2x32xf32>, vector<32x128xf32>, vector<2x128xf32> -> vector<2x128xf32>
    %263 = arith.addf %261, %262 : vector<2x128xf32>
    %264 = arith.negf %263 : vector<2x128xf32>
    %265 = math.exp %264 : vector<2x128xf32>
    %cst_38 = arith.constant 1.000000e+00 : f32
    %266 = vector.broadcast %cst_38 : f32 to vector<2x128xf32>
    %267 = arith.addf %266, %265 : vector<2x128xf32>
    %268 = arith.divf %266, %267 : vector<2x128xf32>
    %269 = math.tanh %263 : vector<2x128xf32>
    %270 = vector.extract_strided_slice %268 {offsets = [0, 0], sizes = [2, 32], strides = [1, 1]} : vector<2x128xf32> to vector<2x32xf32>
    %271 = vector.extract_strided_slice %268 {offsets = [0, 32], sizes = [2, 32], strides = [1, 1]} : vector<2x128xf32> to vector<2x32xf32>
    %272 = vector.extract_strided_slice %269 {offsets = [0, 64], sizes = [2, 32], strides = [1, 1]} : vector<2x128xf32> to vector<2x32xf32>
    %273 = vector.extract_strided_slice %268 {offsets = [0, 96], sizes = [2, 32], strides = [1, 1]} : vector<2x128xf32> to vector<2x32xf32>
    %274 = arith.mulf %271, %258 : vector<2x32xf32>
    %275 = arith.mulf %270, %272 : vector<2x32xf32>
    %276 = arith.addf %274, %275 : vector<2x32xf32>
    %277 = math.tanh %276 : vector<2x32xf32>
    %278 = arith.mulf %273, %277 : vector<2x32xf32>
    %279 = vector.extract_strided_slice %5 {offsets = [30, 0], sizes = [2, 128], strides = [1, 1]} : vector<32x128xf32> to vector<2x128xf32>
    %cst_39 = arith.constant dense<0.000000e+00> : vector<2x128xf32>
    %280 = tpu.matmul %278, %6, %cst_39 {dimension_numbers = #tpu.dot_dimension_numbers<[1], [0], [0], [1], [0, 0, 1, 1], [], []>} : vector<2x32xf32>, vector<32x128xf32>, vector<2x128xf32> -> vector<2x128xf32>
    %281 = arith.addf %279, %280 : vector<2x128xf32>
    %282 = arith.negf %281 : vector<2x128xf32>
    %283 = math.exp %282 : vector<2x128xf32>
    %cst_40 = arith.constant 1.000000e+00 : f32
    %284 = vector.broadcast %cst_40 : f32 to vector<2x128xf32>
    %285 = arith.addf %284, %283 : vector<2x128xf32>
    %286 = arith.divf %284, %285 : vector<2x128xf32>
    %287 = math.tanh %281 : vector<2x128xf32>
    %288 = vector.extract_strided_slice %286 {offsets = [0, 0], sizes = [2, 32], strides = [1, 1]} : vector<2x128xf32> to vector<2x32xf32>
    %289 = vector.extract_strided_slice %286 {offsets = [0, 32], sizes = [2, 32], strides = [1, 1]} : vector<2x128xf32> to vector<2x32xf32>
    %290 = vector.extract_strided_slice %287 {offsets = [0, 64], sizes = [2, 32], strides = [1, 1]} : vector<2x128xf32> to vector<2x32xf32>
    %291 = vector.extract_strided_slice %286 {offsets = [0, 96], sizes = [2, 32], strides = [1, 1]} : vector<2x128xf32> to vector<2x32xf32>
    %292 = arith.mulf %289, %276 : vector<2x32xf32>
    %293 = arith.mulf %288, %290 : vector<2x32xf32>
    %294 = arith.addf %292, %293 : vector<2x32xf32>
    %295 = math.tanh %294 : vector<2x32xf32>
    %296 = arith.mulf %291, %295 : vector<2x32xf32>
    %c0_41 = arith.constant 0 : index
    %c0_42 = arith.constant 0 : index
    %297 = vector.load %arg4[%c0_41, %c0_42] : memref<32x128xf32, #tpu.memory_space<vmem>>, vector<32x128xf32>
    %cst_43 = arith.constant dense<0.000000e+00> : vector<2x128xf32>
    %298 = tpu.matmul %296, %297, %cst_43 {dimension_numbers = #tpu.dot_dimension_numbers<[1], [0], [0], [1], [0, 0, 1, 1], [], []>} : vector<2x32xf32>, vector<32x128xf32>, vector<2x128xf32> -> vector<2x128xf32>
    %c0_44 = arith.constant 0 : index
    %c0_45 = arith.constant 0 : index
    %299 = vector.load %arg5[%c0_44, %c0_45] : memref<1x128xf32, #tpu.memory_space<vmem>>, vector<1x128xf32>
    %300 = vector.broadcast %299 : vector<1x128xf32> to vector<2x128xf32>
    %301 = arith.addf %298, %300 : vector<2x128xf32>
    %302 = arith.negf %301 : vector<2x128xf32>
    %303 = math.exp %302 : vector<2x128xf32>
    %cst_46 = arith.constant 1.000000e+00 : f32
    %304 = vector.broadcast %cst_46 : f32 to vector<2x128xf32>
    %305 = arith.addf %304, %303 : vector<2x128xf32>
    %306 = arith.divf %304, %305 : vector<2x128xf32>
    %307 = math.tanh %301 : vector<2x128xf32>
    %308 = vector.extract_strided_slice %306 {offsets = [0, 0], sizes = [2, 32], strides = [1, 1]} : vector<2x128xf32> to vector<2x32xf32>
    %309 = vector.extract_strided_slice %307 {offsets = [0, 64], sizes = [2, 32], strides = [1, 1]} : vector<2x128xf32> to vector<2x32xf32>
    %310 = vector.extract_strided_slice %306 {offsets = [0, 96], sizes = [2, 32], strides = [1, 1]} : vector<2x128xf32> to vector<2x32xf32>
    %311 = arith.mulf %308, %309 : vector<2x32xf32>
    %312 = math.tanh %311 : vector<2x32xf32>
    %313 = arith.mulf %310, %312 : vector<2x32xf32>
    %c0_47 = arith.constant 0 : index
    %c0_48 = arith.constant 0 : index
    %314 = vector.load %arg6[%c0_47, %c0_48] : memref<1x32xf32, #tpu.memory_space<vmem>>, vector<1x32xf32>
    %315 = vector.broadcast %314 : vector<1x32xf32> to vector<2x32xf32>
    %316 = arith.mulf %313, %315 : vector<2x32xf32>
    %cst_49 = arith.constant dense<0.000000e+00> : vector<2xf32>
    %317 = vector.multi_reduction <add>, %316, %cst_49 [1] : vector<2x32xf32> to vector<2xf32>
    %318 = vector.shape_cast %317 : vector<2xf32> to vector<2x1xf32>
    %c0_50 = arith.constant 0 : index
    %c0_51 = arith.constant 0 : index
    %319 = vector.load %arg7[%c0_50, %c0_51] : memref<1x1xf32, #tpu.memory_space<vmem>>, vector<1x1xf32>
    %320 = vector.broadcast %319 : vector<1x1xf32> to vector<2x1xf32>
    %321 = arith.addf %318, %320 : vector<2x1xf32>
    %c0_52 = arith.constant 0 : index
    %c0_53 = arith.constant 0 : index
    %322 = vector.load %arg8[%c0_52, %c0_53] : memref<2x1xf32, #tpu.memory_space<vmem>>, vector<2x1xf32>
    tpu.vector_store %arg8[%c0_52, %c0_53], %321 {strides = array<i32>} : memref<2x1xf32, #tpu.memory_space<vmem>>, vector<2x1xf32>,
    return
  }
}

</mosaic_0001>

<bundles_post_ra>
// kernel: tpu_custom_call.1
= control target key start
LH: loop header
LB: loop body
LE: loop exit
PB: predicated region body
PF: predicated region fallthrough
CT: control target
= control target key end

     0   :  { %s1793_s0 = inlined_call_operand.vmem [shape: f32[32,8], index: 0, kind: input, shape index: {}]   ;;  %s1794_s1 = inlined_call_operand.vmem [shape: f32[8,128], index: 1, kind: input, shape index: {}]   ;;  %s1795_s2 = inlined_call_operand.vmem [shape: f32[32,128], index: 2, kind: input, shape index: {}]   ;;  %s1796_s3 = inlined_call_operand.vmem [shape: f32[1,128], index: 3, kind: input, shape index: {}]   ;;  %s1797_s4 = inlined_call_operand.hbm [shape: f32[32,128], index: 4, kind: input, shape index: {}]   ;;  %s1798_s5 = inlined_call_operand.vmem [shape: f32[1,128], index: 5, kind: input, shape index: {}]   ;;  %s1799_s6 = inlined_call_operand.vmem [shape: f32[1,32], index: 6, kind: input, shape index: {}]   ;;  %s1800_s7 = inlined_call_operand.<no memory space> [shape: f32[1,1], index: 7, kind: input, shape index: {}]   ;;  %s1801_s8 = inlined_call_operand.vmem [shape: f32[2,1], index: 8, kind: output, shape index: {}]  }
   0x1   :  { %v13_v0 = vstv %s1800_s7 }
   0x2   :  { %14 = vst [vmem:[#allocation2] sm:$0x1] %v13_v0 }
   0x3   :  { %15 = vsyncpa [#allocation4], 0  ;;  %s28_s9 = sshll.u32 %s1797_s4, 4  ;;  %s1504_s10 = smov [#allocation3]   ;;  %s29_s9 = int_to_ptr.hbm [resolvable:$true] %s28_s9 }
   0x4   :  { %s30_s11 = sshll.u32 %s1504_s10, 4  ;;  %s1505_s12 = smov 128   ;;  %s31_s11 = int_to_ptr.vmem [resolvable:$true] %s30_s11 }
   0x5   :  { %s1506_s13 = smov 8  }
   0x6   :  { %36 = dma.hbm_to_vmem [thread:$0]  %s29_s9, 512, %s31_s11, [#allocation4], %s1505_s12, %s1505_s12, %s1506_s13  }
   0x7   :  { %1502 = dma.done.wait [#allocation4], 512  }
   0x8   :  { %1503 = vsyncadd [#allocation4], 4294966784  ;;  %vm56_vm0 = vcmask 64512   ;;  %v1565_v1 = vld [vmem:[%s1795_s2 + $0x18] sm:$0xff]  ;;  %v1570_v2 = vld [vmem:[%s1795_s2 + $0x10] sm:$0xff]  ;;  %v1507_v7 = vmov 0.0  }
   0x9   :  { %v51_v3 = vld [vmem:[%s1794_s1] sm:$0xff]  ;;  %118 = vmatpush.msra.mxu1 %v1565_v1  ;;  %v1582_v5 = vld [vmem:[%s1795_s2 + $0x8] sm:$0xff]  ;;  %181 = vmatpush.msra.mxu2 %v1565_v1  ;;  %s1508_s24 = smov 64   ;;  %s1509_s25 = smov 32   ;;  %vm102_vm5 = vcmask 261120  }
   0xa   :  { %84 = vmatpush.msra.mxu0 %v51_v3  ;;  %v47_v4 = vld [vmem:[%s1793_s0] sm:$0xff]  ;;  %251 = vmatpush.msra.mxu3 %v1565_v1  ;;  %s1510_s12 = smov 96  }
   0xb   :  { %1293 = vmatmul.msk.f32.vlgmr.msra.gmra.mxu0 %vm56_vm0, %v47_v4  ;;  %119 = vmatpush.msra.mxu1 %v1570_v2  ;;  %v1591_v6 = vld [vmem:[%s1795_s2] sm:$0xff] }
   0xc   :  { %182 = vmatpush.msra.mxu2 %v1570_v2  ;;  %943 = vmatpush.msrb.mxu0 %v1565_v1  ;;  %v1624_v8 = vld [vmem:[%s1796_s3] ss:$0 sm:$0xff] }
   0xd   :  { %120 = vmatpush.msra.mxu1 %v1582_v5  ;;  %252 = vmatpush.msra.mxu3 %v1570_v2 }
   0xe   :  { %183 = vmatpush.msra.mxu2 %v1582_v5  ;;  %944 = vmatpush.msrb.mxu0 %v1570_v2 }
   0xf   :  { %121 = vmatpush.msra.mxu1 %v1591_v6  ;;  %253 = vmatpush.msra.mxu3 %v1582_v5 }
  0x10   :  { %122 = vmatmul.f32.vlgmr.msra.gmra.mxu1 %v1507_v7  ;;  %184 = vmatpush.msra.mxu2 %v1591_v6 }
  0x11   :  { %254 = vmatpush.msra.mxu3 %v1591_v6  ;;  %321 = vmatpush.msrb.mxu1 %v1565_v1 }
  0x12   :  { %391 = vmatpush.msrb.mxu2 %v1565_v1  ;;  %945 = vmatpush.msrb.mxu0 %v1582_v5 }
  0x13   :  { %457 = vmatpush.msrb.mxu3 %v1565_v1  ;;  %322 = vmatpush.msrb.mxu1 %v1570_v2 }
  0x14   :  { %392 = vmatpush.msrb.mxu2 %v1570_v2  ;;  %946 = vmatpush.msrb.mxu0 %v1591_v6 }
  0x15   :  { %458 = vmatpush.msrb.mxu3 %v1570_v2  ;;  %323 = vmatpush.msrb.mxu1 %v1582_v5 }
  0x16   :  { %393 = vmatpush.msrb.mxu2 %v1582_v5 }
  0x17   :  { %459 = vmatpush.msrb.mxu3 %v1582_v5  ;;  %324 = vmatpush.msrb.mxu1 %v1591_v6 }
  0x18   :  { %394 = vmatpush.msrb.mxu2 %v1591_v6 }
  0x19   :  { %460 = vmatpush.msrb.mxu3 %v1591_v6  ;;  %527 = vmatpush.msra.mxu1 %v1565_v1 }
  0x1b   :  { %528 = vmatpush.msra.mxu1 %v1570_v2 }
  0x1d   :  { %529 = vmatpush.msra.mxu1 %v1582_v5 }
  0x1f   :  { %530 = vmatpush.msra.mxu1 %v1591_v6 }
  0x88   :  { %v86_v9 = vpop.f32.mrf.mxu0 }
  0x89   :  { %v1627_v10 = vadd.f32 %v1624_v8, %v86_v9 }
  0x8d   :  { %v123_v11 = vpop.f32.mrf.mxu1 }
  0x8e   :  { %v126_v12 = vadd.f32 %v123_v11, %v1627_v10 }
  0x90   :  { %1341 = vtanh.f32 %v126_v12  ;;  %v1297_v14 = vmul.f32 -1.442695, %v126_v12 }
  0x92   :  { %1343 = vpow2.f32 %v1297_v14 }
  0x96   :  { %v1342_v13 = vpop.eup %1341 }
  0x97   :  { %149 = vrot.lane.b32.xlu0 %v1342_v13, %s1508_s24 }
  0x98   :  { %v1344_v15 = vpop.eup %1343 }
  0x99   :  { %v130_v16 = vadd.f32 1.0, %v1344_v15 }
  0x9b   :  { %1345 = vrcp.f32 %v130_v16  ;;  %v142_v22 = vand.u32 2147483648, %v130_v16  ;;  %vm136_vm2 = vweird.f32 %v130_v16  ;;  %v140_v23 = vand.u32 2147483647, %v130_v16 }
  0x9d   :  { %v143_v25 = vor.u32 1.1754944e-38, %v142_v22  ;;  %vm141_vm4 = vcmp.eq.f32.partialorder %v140_v23, 8.507059e+37 }
  0xa1   :  { %v1346_v17 = vpop.eup %1345 }
  0xa2   :  { %v132_v18 = vmul.f32 %v1346_v17, %v130_v16  ;;  %vm137_vm1 = vweird.f32 %v1346_v17 }
  0xa3   :  { %vm138_vm3 = vmor %vm136_vm2, %vm137_vm1 }
  0xa4   :  { %v133_v19 = vsub.f32 1.0, %v132_v18 }
  0xa6   :  { %v134_v20 = vmul.f32 %v1346_v17, %v133_v19 }
  0xa8   :  { %v135_v21 = vadd.f32 %v1346_v17, %v134_v20 }
  0xaa   :  { %v139_v24 = vsel %vm138_vm3, %v1346_v17, %v135_v21 }
  0xab   :  { %v144_v27 = vsel %vm141_vm4, %v143_v25, %v139_v24 }
  0xac   :  { %v147_v29 = vmul.f32 0.0, %v144_v27 }
 0x109   :  { %v150_v26 = vpop.permute.xlu0 %149 }
 0x10a   :  { %v152_v28 = vmul.f32 %v150_v26, %v144_v27 }
 0x10c   :  { %154 = vrot.lane.b32.xlu0 %v152_v28, %s1509_s25 }
 0x17e   :  { %v155_v30 = vpop.permute.xlu0 %154 }
 0x17f   :  { %v157_v31 = vadd.f32 %v155_v30, %v147_v29 }
 0x181   :  { %1347 = vtanh.f32 %v157_v31  ;;  %v214_v55 = vrot.slane %v157_v31, 6 }
 0x187   :  { %v1348_v32 = vpop.eup %1347 }
 0x188   :  { %160 = vrot.lane.b32.xlu1 %v1348_v32, %s1508_s24 }
 0x1fa   :  { %v161_v33 = vpop.permute.xlu1 %160 }
 0x1fb   :  { %v163_v34 = vmul.f32 %v161_v33, %v144_v27 }
 0x1fd   :  { %165 = vrot.lane.b32.xlu1 %v163_v34, %s1509_s25 }
 0x26f   :  { %v166_v35 = vpop.permute.xlu1 %165 }
 0x270   :  { %1298 = vmatmul.msk.f32.vlgmr.msra.gmra.mxu2 %vm102_vm5, %v166_v35 }
 0x271   :  { %597 = vmatpush.msra.mxu2 %v1565_v1 }
 0x273   :  { %598 = vmatpush.msra.mxu2 %v1570_v2 }
 0x275   :  { %599 = vmatpush.msra.mxu2 %v1582_v5 }
 0x277   :  { %600 = vmatpush.msra.mxu2 %v1591_v6 }
 0x2f3   :  { %v186_v36 = vpop.f32.mrf.mxu2 }
 0x2f4   :  { %v190_v37 = vrot.slane %v186_v36, 6 }
 0x2f6   :  { %v192_v38 = vadd.f32 %v190_v37, %v1627_v10 }
 0x2f8   :  { %1349 = vtanh.f32 %v192_v38  ;;  %v1299_v40 = vmul.f32 -1.442695, %v192_v38 }
 0x2fa   :  { %1351 = vpow2.f32 %v1299_v40 }
 0x2fe   :  { %v1350_v39 = vpop.eup %1349 }
 0x2ff   :  { %218 = vrot.lane.b32.xlu2 %v1350_v39, %s1508_s24 }
 0x300   :  { %v1352_v41 = vpop.eup %1351 }
 0x301   :  { %v196_v42 = vadd.f32 1.0, %v1352_v41 }
 0x303   :  { %1353 = vrcp.f32 %v196_v42  ;;  %v208_v48 = vand.u32 2147483648, %v196_v42  ;;  %vm202_vm7 = vweird.f32 %v196_v42  ;;  %v206_v49 = vand.u32 2147483647, %v196_v42 }
 0x305   :  { %v209_v51 = vor.u32 1.1754944e-38, %v208_v48  ;;  %vm207_vm9 = vcmp.eq.f32.partialorder %v206_v49, 8.507059e+37 }
 0x309   :  { %v1354_v43 = vpop.eup %1353 }
 0x30a   :  { %v198_v44 = vmul.f32 %v1354_v43, %v196_v42  ;;  %vm203_vm6 = vweird.f32 %v1354_v43 }
 0x30b   :  { %vm204_vm8 = vmor %vm202_vm7, %vm203_vm6 }
 0x30c   :  { %v199_v45 = vsub.f32 1.0, %v198_v44 }
 0x30e   :  { %v200_v46 = vmul.f32 %v1354_v43, %v199_v45 }
 0x310   :  { %v201_v47 = vadd.f32 %v1354_v43, %v200_v46 }
 0x312   :  { %v205_v50 = vsel %vm204_vm8, %v1354_v43, %v201_v47 }
 0x313   :  { %v210_v53 = vsel %vm207_vm9, %v209_v51, %v205_v50 }
 0x314   :  { %v216_v56 = vmul.f32 %v214_v55, %v210_v53 }
 0x359   :  { %v219_v52 = vpop.permute.xlu2 %218 }
 0x35a   :  { %v221_v54 = vmul.f32 %v219_v52, %v210_v53 }
 0x35c   :  { %223 = vrot.lane.b32.xlu2 %v221_v54, %s1509_s25 }
 0x3b6   :  { %v224_v57 = vpop.permute.xlu2 %223 }
 0x3b7   :  { %v226_v58 = vadd.f32 %v224_v57, %v216_v56 }
 0x3b9   :  { %1355 = vtanh.f32 %v226_v58  ;;  %v284_v25 = vrot.slane %v226_v58, 6 }
 0x3bf   :  { %v1356_v59 = vpop.eup %1355 }
 0x3c0   :  { %229 = vrot.lane.b32.xlu0 %v1356_v59, %s1508_s24 }
 0x432   :  { %v230_v60 = vpop.permute.xlu0 %229 }
 0x433   :  { %v232_v61 = vmul.f32 %v230_v60, %v210_v53  ;;  %v48_v60 = vld [vmem:[%s1793_s0 + $0x8] sm:$0xff] }
 0x434   :  { %1294 = vmatmul.msk.f32.gmra.mxu0 %vm56_vm0, %v48_v60 }
 0x435   :  { %v234_v62 = vrot.slane %v232_v61, 2 }
 0x437   :  { %235 = vrot.lane.b32.xlu1 %v234_v62, %s1509_s25 }
 0x4a9   :  { %v236_v63 = vpop.permute.xlu1 %235 }
 0x4aa   :  { %1300 = vmatmul.msk.f32.vlgmr.msra.gmra.mxu3 %vm102_vm5, %v236_v63 }
 0x4ab   :  { %667 = vmatpush.msra.mxu3 %v1565_v1 }
 0x4ad   :  { %668 = vmatpush.msra.mxu3 %v1570_v2 }
 0x4af   :  { %669 = vmatpush.msra.mxu3 %v1582_v5 }
 0x4b1   :  { %670 = vmatpush.msra.mxu3 %v1591_v6  ;;  %v89_v62 = vpop.f32.mrf.mxu0 }
 0x4b2   :  { %v1674_v63 = vadd.f32 %v1624_v8, %v89_v62 }
 0x52d   :  { %v256_v0 = vpop.f32.mrf.mxu3 }
 0x52e   :  { %v260_v3 = vrot.slane %v256_v0, 4 }
 0x530   :  { %v262_v4 = vadd.f32 %v260_v3, %v1627_v10 }
 0x532   :  { %1357 = vtanh.f32 %v262_v4  ;;  %v1301_v9 = vmul.f32 -1.442695, %v262_v4 }
 0x534   :  { %1359 = vpow2.f32 %v1301_v9 }
 0x538   :  { %v1358_v7 = vpop.eup %1357 }
 0x539   :  { %288 = vrot.lane.b32.xlu2 %v1358_v7, %s1508_s24 }
 0x53a   :  { %v1360_v11 = vpop.eup %1359 }
 0x53b   :  { %v266_v12 = vadd.f32 1.0, %v1360_v11 }
 0x53d   :  { %1361 = vrcp.f32 %v266_v12  ;;  %v278_v18 = vand.u32 2147483648, %v266_v12  ;;  %vm272_vm11 = vweird.f32 %v266_v12  ;;  %v276_v19 = vand.u32 2147483647, %v266_v12 }
 0x53f   :  { %v279_v21 = vor.u32 1.1754944e-38, %v278_v18  ;;  %vm277_vm13 = vcmp.eq.f32.partialorder %v276_v19, 8.507059e+37 }
 0x543   :  { %v1362_v13 = vpop.eup %1361 }
 0x544   :  { %v268_v14 = vmul.f32 %v1362_v13, %v266_v12  ;;  %vm273_vm10 = vweird.f32 %v1362_v13 }
 0x545   :  { %vm274_vm12 = vmor %vm272_vm11, %vm273_vm10 }
 0x546   :  { %v269_v15 = vsub.f32 1.0, %v268_v14 }
 0x548   :  { %v270_v16 = vmul.f32 %v1362_v13, %v269_v15 }
 0x54a   :  { %v271_v17 = vadd.f32 %v1362_v13, %v270_v16 }
 0x54c   :  { %v275_v20 = vsel %vm274_vm12, %v1362_v13, %v271_v17 }
 0x54d   :  { %v280_v23 = vsel %vm277_vm13, %v279_v21, %v275_v20 }
 0x54e   :  { %v286_v26 = vmul.f32 %v284_v25, %v280_v23 }
 0x593   :  { %v289_v22 = vpop.permute.xlu2 %288 }
 0x594   :  { %v291_v24 = vmul.f32 %v289_v22, %v280_v23 }
 0x596   :  { %293 = vrot.lane.b32.xlu0 %v291_v24, %s1509_s25 }
 0x608   :  { %v294_v27 = vpop.permute.xlu0 %293 }
 0x609   :  { %v296_v28 = vadd.f32 %v294_v27, %v286_v26 }
 0x60b   :  { %1363 = vtanh.f32 %v296_v28  ;;  %v354_v52 = vrot.slane %v296_v28, 6 }
 0x611   :  { %v1364_v29 = vpop.eup %1363 }
 0x612   :  { %299 = vrot.lane.b32.xlu1 %v1364_v29, %s1508_s24 }
 0x684   :  { %v300_v30 = vpop.permute.xlu1 %299 }
 0x685   :  { %v302_v31 = vmul.f32 %v300_v30, %v280_v23 }
 0x687   :  { %v304_v32 = vrot.slane %v302_v31, 4 }
 0x689   :  { %305 = vrot.lane.b32.xlu2 %v304_v32, %s1509_s25 }
 0x6e3   :  { %v306_v33 = vpop.permute.xlu2 %305 }
 0x6e4   :  { %1302 = vmatmul.msk.f32.vlgmr.msrb.gmra.mxu1 %vm102_vm5, %v306_v33 }
 0x6e5   :  { %733 = vmatpush.msrb.mxu1 %v1565_v1 }
 0x6e7   :  { %734 = vmatpush.msrb.mxu1 %v1570_v2 }
 0x6e9   :  { %735 = vmatpush.msrb.mxu1 %v1582_v5 }
 0x6eb   :  { %736 = vmatpush.msrb.mxu1 %v1591_v6 }
 0x761   :  { %v326_v34 = vpop.f32.mrf.mxu1 }
 0x762   :  { %v330_v35 = vrot.slane %v326_v34, 2 }
 0x764   :  { %v332_v36 = vadd.f32 %v330_v35, %v1627_v10 }
 0x766   :  { %1365 = vtanh.f32 %v332_v36  ;;  %v1303_v38 = vmul.f32 -1.442695, %v332_v36 }
 0x768   :  { %1367 = vpow2.f32 %v1303_v38 }
 0x76c   :  { %v1366_v37 = vpop.eup %1365 }
 0x76d   :  { %358 = vrot.lane.b32.xlu0 %v1366_v37, %s1508_s24 }
 0x76e   :  { %v1368_v39 = vpop.eup %1367 }
 0x76f   :  { %v336_v40 = vadd.f32 1.0, %v1368_v39 }
 0x771   :  { %1369 = vrcp.f32 %v336_v40  ;;  %v348_v46 = vand.u32 2147483648, %v336_v40  ;;  %vm342_vm15 = vweird.f32 %v336_v40  ;;  %v346_v47 = vand.u32 2147483647, %v336_v40 }
 0x773   :  { %v349_v48 = vor.u32 1.1754944e-38, %v348_v46  ;;  %vm347_vm2 = vcmp.eq.f32.partialorder %v346_v47, 8.507059e+37 }
 0x777   :  { %v1370_v41 = vpop.eup %1369 }
 0x778   :  { %v338_v42 = vmul.f32 %v1370_v41, %v336_v40  ;;  %vm343_vm14 = vweird.f32 %v1370_v41 }
 0x779   :  { %vm344_vm1 = vmor %vm342_vm15, %vm343_vm14 }
 0x77a   :  { %v339_v43 = vsub.f32 1.0, %v338_v42 }
 0x77c   :  { %v340_v44 = vmul.f32 %v1370_v41, %v339_v43 }
 0x77e   :  { %v341_v45 = vadd.f32 %v1370_v41, %v340_v44 }
 0x780   :  { %v345_v10 = vsel %vm344_vm1, %v1370_v41, %v341_v45 }
 0x781   :  { %v350_v50 = vsel %vm347_vm2, %v349_v48, %v345_v10 }
 0x782   :  { %v356_v53 = vmul.f32 %v354_v52, %v350_v50 }
 0x7df   :  { %v359_v49 = vpop.permute.xlu0 %358 }
 0x7e0   :  { %v361_v51 = vmul.f32 %v359_v49, %v350_v50 }
 0x7e2   :  { %363 = vrot.lane.b32.xlu1 %v361_v51, %s1509_s25 }
 0x854   :  { %v364_v54 = vpop.permute.xlu1 %363 }
 0x855   :  { %v366_v55 = vadd.f32 %v364_v54, %v356_v53 }
 0x857   :  { %1371 = vtanh.f32 %v366_v55  ;;  %v421_v24 = vrot.slane %v366_v55, 6 }
 0x85d   :  { %v1372_v56 = vpop.eup %1371 }
 0x85e   :  { %369 = vrot.lane.b32.xlu2 %v1372_v56, %s1508_s24 }
 0x8b8   :  { %v370_v57 = vpop.permute.xlu2 %369 }
 0x8b9   :  { %v372_v58 = vmul.f32 %v370_v57, %v350_v50 }
 0x8bb   :  { %v374_v59 = vrot.slane %v372_v58, 6 }
 0x8bd   :  { %375 = vrot.lane.b32.xlu0 %v374_v59, %s1509_s25 }
 0x92f   :  { %v376_v61 = vpop.permute.xlu0 %375 }
 0x930   :  { %1304 = vmatmul.msk.f32.vlgmr.msrb.gmra.mxu2 %vm102_vm5, %v376_v61 }
 0x931   :  { %803 = vmatpush.msrb.mxu2 %v1565_v1 }
 0x933   :  { %804 = vmatpush.msrb.mxu2 %v1570_v2 }
 0x935   :  { %805 = vmatpush.msrb.mxu2 %v1582_v5 }
 0x937   :  { %806 = vmatpush.msrb.mxu2 %v1591_v6 }
 0x9b3   :  { %v396_v0 = vpop.f32.mrf.mxu2 }
 0x9b4   :  { %v399_v3 = vadd.f32 %v396_v0, %v1674_v63 }
 0x9b6   :  { %1373 = vtanh.f32 %v399_v3  ;;  %v1305_v7 = vmul.f32 -1.442695, %v399_v3 }
 0x9b8   :  { %1375 = vpow2.f32 %v1305_v7 }
 0x9bc   :  { %v1374_v4 = vpop.eup %1373 }
 0x9bd   :  { %425 = vrot.lane.b32.xlu1 %v1374_v4, %s1508_s24 }
 0x9be   :  { %v1376_v9 = vpop.eup %1375 }
 0x9bf   :  { %v403_v11 = vadd.f32 1.0, %v1376_v9 }
 0x9c1   :  { %1377 = vrcp.f32 %v403_v11  ;;  %v415_v17 = vand.u32 2147483648, %v403_v11  ;;  %vm409_vm4 = vweird.f32 %v403_v11  ;;  %v413_v18 = vand.u32 2147483647, %v403_v11 }
 0x9c3   :  { %v416_v20 = vor.u32 1.1754944e-38, %v415_v17  ;;  %vm414_vm7 = vcmp.eq.f32.partialorder %v413_v18, 8.507059e+37 }
 0x9c7   :  { %v1378_v12 = vpop.eup %1377 }
 0x9c8   :  { %v405_v13 = vmul.f32 %v1378_v12, %v403_v11  ;;  %vm410_vm3 = vweird.f32 %v1378_v12 }
 0x9c9   :  { %vm411_vm6 = vmor %vm409_vm4, %vm410_vm3 }
 0x9ca   :  { %v406_v14 = vsub.f32 1.0, %v405_v13 }
 0x9cc   :  { %v407_v15 = vmul.f32 %v1378_v12, %v406_v14 }
 0x9ce   :  { %v408_v16 = vadd.f32 %v1378_v12, %v407_v15 }
 0x9d0   :  { %v412_v19 = vsel %vm411_vm6, %v1378_v12, %v408_v16 }
 0x9d1   :  { %v417_v22 = vsel %vm414_vm7, %v416_v20, %v412_v19 }
 0x9d2   :  { %v423_v25 = vmul.f32 %v421_v24, %v417_v22 }
 0xa2f   :  { %v426_v21 = vpop.permute.xlu1 %425 }
 0xa30   :  { %v428_v23 = vmul.f32 %v426_v21, %v417_v22 }
 0xa32   :  { %430 = vrot.lane.b32.xlu2 %v428_v23, %s1509_s25 }
 0xa8c   :  { %v431_v26 = vpop.permute.xlu2 %430 }
 0xa8d   :  { %v433_v27 = vadd.f32 %v431_v26, %v423_v25 }
 0xa8f   :  { %1379 = vtanh.f32 %v433_v27  ;;  %v490_v50 = vrot.slane %v433_v27, 6 }
 0xa95   :  { %v1380_v28 = vpop.eup %1379 }
 0xa96   :  { %436 = vrot.lane.b32.xlu0 %v1380_v28, %s1508_s24 }
 0xb08   :  { %v437_v29 = vpop.permute.xlu0 %436 }
 0xb09   :  { %v439_v30 = vmul.f32 %v437_v29, %v417_v22 }
 0xb0b   :  { %441 = vrot.lane.b32.xlu1 %v439_v30, %s1509_s25 }
 0xb7d   :  { %v442_v31 = vpop.permute.xlu1 %441 }
 0xb7e   :  { %1306 = vmatmul.msk.f32.vlgmr.msrb.gmra.mxu3 %vm102_vm5, %v442_v31 }
 0xb7f   :  { %873 = vmatpush.msrb.mxu3 %v1565_v1 }
 0xb81   :  { %874 = vmatpush.msrb.mxu3 %v1570_v2 }
 0xb83   :  { %875 = vmatpush.msrb.mxu3 %v1582_v5 }
 0xb85   :  { %876 = vmatpush.msrb.mxu3 %v1591_v6 }
 0xc01   :  { %v462_v32 = vpop.f32.mrf.mxu3 }
 0xc02   :  { %v466_v33 = vrot.slane %v462_v32, 6 }
 0xc04   :  { %v468_v34 = vadd.f32 %v466_v33, %v1674_v63 }
 0xc06   :  { %1381 = vtanh.f32 %v468_v34  ;;  %v1307_v36 = vmul.f32 -1.442695, %v468_v34 }
 0xc08   :  { %1383 = vpow2.f32 %v1307_v36 }
 0xc0c   :  { %v1382_v35 = vpop.eup %1381 }
 0xc0d   :  { %494 = vrot.lane.b32.xlu2 %v1382_v35, %s1508_s24 }
 0xc0e   :  { %v1384_v37 = vpop.eup %1383 }
 0xc0f   :  { %v472_v38 = vadd.f32 1.0, %v1384_v37 }
 0xc11   :  { %1385 = vrcp.f32 %v472_v38  ;;  %v484_v44 = vand.u32 2147483648, %v472_v38  ;;  %vm478_vm9 = vweird.f32 %v472_v38  ;;  %v482_v45 = vand.u32 2147483647, %v472_v38 }
 0xc13   :  { %v485_v47 = vor.u32 1.1754944e-38, %v484_v44  ;;  %vm483_vm11 = vcmp.eq.f32.partialorder %v482_v45, 8.507059e+37 }
 0xc17   :  { %v1386_v39 = vpop.eup %1385 }
 0xc18   :  { %v474_v40 = vmul.f32 %v1386_v39, %v472_v38  ;;  %vm479_vm8 = vweird.f32 %v1386_v39 }
 0xc19   :  { %vm480_vm10 = vmor %vm478_vm9, %vm479_vm8 }
 0xc1a   :  { %v475_v41 = vsub.f32 1.0, %v474_v40 }
 0xc1c   :  { %v476_v42 = vmul.f32 %v1386_v39, %v475_v41 }
 0xc1e   :  { %v477_v43 = vadd.f32 %v1386_v39, %v476_v42 }
 0xc20   :  { %v481_v46 = vsel %vm480_vm10, %v1386_v39, %v477_v43 }
 0xc21   :  { %v486_v48 = vsel %vm483_vm11, %v485_v47, %v481_v46 }
 0xc22   :  { %v492_v51 = vmul.f32 %v490_v50, %v486_v48 }
 0xc67   :  { %v495_v10 = vpop.permute.xlu2 %494 }
 0xc68   :  { %v497_v49 = vmul.f32 %v495_v10, %v486_v48 }
 0xc6a   :  { %499 = vrot.lane.b32.xlu0 %v497_v49, %s1509_s25 }
 0xcdc   :  { %v500_v52 = vpop.permute.xlu0 %499 }
 0xcdd   :  { %v502_v53 = vadd.f32 %v500_v52, %v492_v51 }
 0xcdf   :  { %1387 = vtanh.f32 %v502_v53  ;;  %v560_v21 = vrot.slane %v502_v53, 6 }
 0xce5   :  { %v1388_v54 = vpop.eup %1387 }
 0xce6   :  { %505 = vrot.lane.b32.xlu1 %v1388_v54, %s1508_s24 }
 0xd58   :  { %v506_v55 = vpop.permute.xlu1 %505 }
 0xd59   :  { %v508_v56 = vmul.f32 %v506_v55, %v486_v48  ;;  %v49_v55 = vld [vmem:[%s1793_s0 + $0x10] sm:$0xff] }
 0xd5a   :  { %1295 = vmatmul.msk.f32.gmra.mxu0 %vm56_vm0, %v49_v55 }
 0xd5b   :  { %v510_v57 = vrot.slane %v508_v56, 2 }
 0xd5d   :  { %511 = vrot.lane.b32.xlu2 %v510_v57, %s1509_s25 }
 0xdb7   :  { %v512_v58 = vpop.permute.xlu2 %511 }
 0xdb8   :  { %1308 = vmatmul.msk.f32.vlgmr.msra.gmra.mxu1 %vm102_vm5, %v512_v58 }
 0xdb9   :  { %1009 = vmatpush.msra.mxu1 %v1565_v1 }
 0xdbb   :  { %1010 = vmatpush.msra.mxu1 %v1570_v2 }
 0xdbd   :  { %1011 = vmatpush.msra.mxu1 %v1582_v5 }
 0xdbf   :  { %1012 = vmatpush.msra.mxu1 %v1591_v6 }
 0xdd7   :  { %v92_v57 = vpop.f32.mrf.mxu0 }
 0xdd8   :  { %v1721_v58 = vadd.f32 %v1624_v8, %v92_v57 }
 0xe35   :  { %v532_v59 = vpop.f32.mrf.mxu1 }
 0xe36   :  { %v536_v60 = vrot.slane %v532_v59, 4 }
 0xe38   :  { %v538_v61 = vadd.f32 %v536_v60, %v1674_v63 }
 0xe3a   :  { %1389 = vtanh.f32 %v538_v61  ;;  %v1309_v0 = vmul.f32 -1.442695, %v538_v61 }
 0xe3c   :  { %1391 = vpow2.f32 %v1309_v0 }
 0xe40   :  { %v1390_v62 = vpop.eup %1389 }
 0xe41   :  { %564 = vrot.lane.b32.xlu0 %v1390_v62, %s1508_s24 }
 0xe42   :  { %v1392_v3 = vpop.eup %1391 }
 0xe43   :  { %v542_v4 = vadd.f32 1.0, %v1392_v3 }
 0xe45   :  { %1393 = vrcp.f32 %v542_v4  ;;  %v554_v14 = vand.u32 2147483648, %v542_v4  ;;  %vm548_vm13 = vweird.f32 %v542_v4  ;;  %v552_v15 = vand.u32 2147483647, %v542_v4 }
 0xe47   :  { %v555_v17 = vor.u32 1.1754944e-38, %v554_v14  ;;  %vm553_vm15 = vcmp.eq.f32.partialorder %v552_v15, 8.507059e+37 }
 0xe4b   :  { %v1394_v7 = vpop.eup %1393 }
 0xe4c   :  { %v544_v9 = vmul.f32 %v1394_v7, %v542_v4  ;;  %vm549_vm12 = vweird.f32 %v1394_v7 }
 0xe4d   :  { %vm550_vm14 = vmor %vm548_vm13, %vm549_vm12 }
 0xe4e   :  { %v545_v11 = vsub.f32 1.0, %v544_v9 }
 0xe50   :  { %v546_v12 = vmul.f32 %v1394_v7, %v545_v11 }
 0xe52   :  { %v547_v13 = vadd.f32 %v1394_v7, %v546_v12 }
 0xe54   :  { %v551_v16 = vsel %vm550_vm14, %v1394_v7, %v547_v13 }
 0xe55   :  { %v556_v19 = vsel %vm553_vm15, %v555_v17, %v551_v16 }
 0xe56   :  { %v562_v22 = vmul.f32 %v560_v21, %v556_v19 }
 0xeb3   :  { %v565_v18 = vpop.permute.xlu0 %564 }
 0xeb4   :  { %v567_v20 = vmul.f32 %v565_v18, %v556_v19 }
 0xeb6   :  { %569 = vrot.lane.b32.xlu1 %v567_v20, %s1509_s25 }
 0xf28   :  { %v570_v23 = vpop.permute.xlu1 %569 }
 0xf29   :  { %v572_v24 = vadd.f32 %v570_v23, %v562_v22 }
 0xf2b   :  { %1395 = vtanh.f32 %v572_v24  ;;  %v630_v10 = vrot.slane %v572_v24, 6 }
 0xf31   :  { %v1396_v25 = vpop.eup %1395 }
 0xf32   :  { %575 = vrot.lane.b32.xlu2 %v1396_v25, %s1508_s24 }
 0xf8c   :  { %v576_v26 = vpop.permute.xlu2 %575 }
 0xf8d   :  { %v578_v27 = vmul.f32 %v576_v26, %v556_v19 }
 0xf8f   :  { %v580_v28 = vrot.slane %v578_v27, 4 }
 0xf91   :  { %581 = vrot.lane.b32.xlu0 %v580_v28, %s1509_s25 }
0x1003   :  { %v582_v29 = vpop.permute.xlu0 %581 }
0x1004   :  { %1310 = vmatmul.msk.f32.vlgmr.msra.gmra.mxu2 %vm102_vm5, %v582_v29 }
0x1005   :  { %1079 = vmatpush.msra.mxu2 %v1565_v1 }
0x1007   :  { %1080 = vmatpush.msra.mxu2 %v1570_v2 }
0x1009   :  { %1081 = vmatpush.msra.mxu2 %v1582_v5 }
0x100b   :  { %1082 = vmatpush.msra.mxu2 %v1591_v6 }
0x1087   :  { %v602_v30 = vpop.f32.mrf.mxu2 }
0x1088   :  { %v606_v31 = vrot.slane %v602_v30, 2 }
0x108a   :  { %v608_v32 = vadd.f32 %v606_v31, %v1674_v63 }
0x108c   :  { %1397 = vtanh.f32 %v608_v32  ;;  %v1311_v34 = vmul.f32 -1.442695, %v608_v32 }
0x108e   :  { %1399 = vpow2.f32 %v1311_v34 }
0x1092   :  { %v1398_v33 = vpop.eup %1397 }
0x1093   :  { %634 = vrot.lane.b32.xlu1 %v1398_v33, %s1508_s24 }
0x1094   :  { %v1400_v35 = vpop.eup %1399 }
0x1095   :  { %v612_v36 = vadd.f32 1.0, %v1400_v35 }
0x1097   :  { %1401 = vrcp.f32 %v612_v36  ;;  %v624_v42 = vand.u32 2147483648, %v612_v36  ;;  %vm618_vm2 = vweird.f32 %v612_v36  ;;  %v622_v43 = vand.u32 2147483647, %v612_v36 }
0x1099   :  { %v625_v44 = vor.u32 1.1754944e-38, %v624_v42  ;;  %vm623_vm4 = vcmp.eq.f32.partialorder %v622_v43, 8.507059e+37 }
0x109d   :  { %v1402_v37 = vpop.eup %1401 }
0x109e   :  { %v614_v38 = vmul.f32 %v1402_v37, %v612_v36  ;;  %vm619_vm1 = vweird.f32 %v1402_v37 }
0x109f   :  { %vm620_vm3 = vmor %vm618_vm2, %vm619_vm1 }
0x10a0   :  { %v615_v39 = vsub.f32 1.0, %v614_v38 }
0x10a2   :  { %v616_v40 = vmul.f32 %v1402_v37, %v615_v39 }
0x10a4   :  { %v617_v41 = vadd.f32 %v1402_v37, %v616_v40 }
0x10a6   :  { %v621_v63 = vsel %vm620_vm3, %v1402_v37, %v617_v41 }
0x10a7   :  { %v626_v46 = vsel %vm623_vm4, %v625_v44, %v621_v63 }
0x10a8   :  { %v632_v48 = vmul.f32 %v630_v10, %v626_v46 }
0x1105   :  { %v635_v45 = vpop.permute.xlu1 %634 }
0x1106   :  { %v637_v47 = vmul.f32 %v635_v45, %v626_v46 }
0x1108   :  { %639 = vrot.lane.b32.xlu2 %v637_v47, %s1509_s25 }
0x1162   :  { %v640_v49 = vpop.permute.xlu2 %639 }
0x1163   :  { %v642_v50 = vadd.f32 %v640_v49, %v632_v48 }
0x1165   :  { %1403 = vtanh.f32 %v642_v50  ;;  %v697_v15 = vrot.slane %v642_v50, 6 }
0x116b   :  { %v1404_v51 = vpop.eup %1403 }
0x116c   :  { %645 = vrot.lane.b32.xlu0 %v1404_v51, %s1508_s24 }
0x11de   :  { %v646_v52 = vpop.permute.xlu0 %645 }
0x11df   :  { %v648_v53 = vmul.f32 %v646_v52, %v626_v46 }
0x11e1   :  { %v650_v54 = vrot.slane %v648_v53, 6 }
0x11e3   :  { %651 = vrot.lane.b32.xlu1 %v650_v54, %s1509_s25 }
0x1255   :  { %v652_v56 = vpop.permute.xlu1 %651 }
0x1256   :  { %1312 = vmatmul.msk.f32.vlgmr.msra.gmra.mxu3 %vm102_vm5, %v652_v56 }
0x1257   :  { %1149 = vmatpush.msra.mxu3 %v1565_v1 }
0x1259   :  { %1150 = vmatpush.msra.mxu3 %v1570_v2 }
0x125b   :  { %1151 = vmatpush.msra.mxu3 %v1582_v5 }
0x125d   :  { %1152 = vmatpush.msra.mxu3 %v1591_v6 }
0x12d9   :  { %v672_v59 = vpop.f32.mrf.mxu3 }
0x12da   :  { %v675_v60 = vadd.f32 %v672_v59, %v1721_v58 }
0x12dc   :  { %1405 = vtanh.f32 %v675_v60  ;;  %v1313_v62 = vmul.f32 -1.442695, %v675_v60 }
0x12de   :  { %1407 = vpow2.f32 %v1313_v62 }
0x12e2   :  { %v1406_v61 = vpop.eup %1405 }
0x12e3   :  { %701 = vrot.lane.b32.xlu2 %v1406_v61, %s1508_s24 }
0x12e4   :  { %v1408_v1 = vpop.eup %1407 }
0x12e5   :  { %v679_v0 = vadd.f32 1.0, %v1408_v1 }
0x12e7   :  { %1409 = vrcp.f32 %v679_v0  ;;  %v691_v8 = vand.u32 2147483648, %v679_v0  ;;  %vm685_vm7 = vweird.f32 %v679_v0  ;;  %v689_v7 = vand.u32 2147483647, %v679_v0 }
0x12e9   :  { %v692_v11 = vor.u32 1.1754944e-38, %v691_v8  ;;  %vm690_vm9 = vcmp.eq.f32.partialorder %v689_v7, 8.507059e+37 }
0x12ed   :  { %v1410_v2 = vpop.eup %1409 }
0x12ee   :  { %v681_v5 = vmul.f32 %v1410_v2, %v679_v0  ;;  %vm686_vm6 = vweird.f32 %v1410_v2 }
0x12ef   :  { %vm687_vm8 = vmor %vm685_vm7, %vm686_vm6 }
0x12f0   :  { %v682_v3 = vsub.f32 1.0, %v681_v5 }
0x12f2   :  { %v683_v6 = vmul.f32 %v1410_v2, %v682_v3 }
0x12f4   :  { %v684_v4 = vadd.f32 %v1410_v2, %v683_v6 }
0x12f6   :  { %v688_v9 = vsel %vm687_vm8, %v1410_v2, %v684_v4 }
0x12f7   :  { %v693_v13 = vsel %vm690_vm9, %v692_v11, %v688_v9 }
0x12f8   :  { %v699_v16 = vmul.f32 %v697_v15, %v693_v13 }
0x133d   :  { %v702_v12 = vpop.permute.xlu2 %701 }
0x133e   :  { %v704_v14 = vmul.f32 %v702_v12, %v693_v13 }
0x1340   :  { %706 = vrot.lane.b32.xlu0 %v704_v14, %s1509_s25 }
0x13b2   :  { %v707_v17 = vpop.permute.xlu0 %706 }
0x13b3   :  { %v709_v18 = vadd.f32 %v707_v17, %v699_v16 }
0x13b5   :  { %1411 = vtanh.f32 %v709_v18  ;;  %v766_v42 = vrot.slane %v709_v18, 6 }
0x13bb   :  { %v1412_v19 = vpop.eup %1411 }
0x13bc   :  { %712 = vrot.lane.b32.xlu1 %v1412_v19, %s1508_s24 }
0x142e   :  { %v713_v20 = vpop.permute.xlu1 %712 }
0x142f   :  { %v715_v21 = vmul.f32 %v713_v20, %v693_v13 }
0x1431   :  { %717 = vrot.lane.b32.xlu2 %v715_v21, %s1509_s25 }
0x148b   :  { %v718_v22 = vpop.permute.xlu2 %717 }
0x148c   :  { %1314 = vmatmul.msk.f32.vlgmr.msrb.gmra.mxu1 %vm102_vm5, %v718_v22 }
0x1509   :  { %v738_v23 = vpop.f32.mrf.mxu1 }
0x150a   :  { %v742_v24 = vrot.slane %v738_v23, 6 }
0x150c   :  { %v744_v25 = vadd.f32 %v742_v24, %v1721_v58 }
0x150e   :  { %1413 = vtanh.f32 %v744_v25  ;;  %v1315_v27 = vmul.f32 -1.442695, %v744_v25 }
0x1510   :  { %1415 = vpow2.f32 %v1315_v27 }
0x1514   :  { %v1414_v26 = vpop.eup %1413 }
0x1515   :  { %770 = vrot.lane.b32.xlu0 %v1414_v26, %s1508_s24 }
0x1516   :  { %v1416_v28 = vpop.eup %1415 }
0x1517   :  { %v748_v29 = vadd.f32 1.0, %v1416_v28 }
0x1519   :  { %1417 = vrcp.f32 %v748_v29  ;;  %v760_v35 = vand.u32 2147483648, %v748_v29  ;;  %vm754_vm11 = vweird.f32 %v748_v29  ;;  %v758_v36 = vand.u32 2147483647, %v748_v29 }
0x151b   :  { %v761_v38 = vor.u32 1.1754944e-38, %v760_v35  ;;  %vm759_vm13 = vcmp.eq.f32.partialorder %v758_v36, 8.507059e+37 }
0x151f   :  { %v1418_v30 = vpop.eup %1417 }
0x1520   :  { %v750_v31 = vmul.f32 %v1418_v30, %v748_v29  ;;  %vm755_vm10 = vweird.f32 %v1418_v30 }
0x1521   :  { %vm756_vm12 = vmor %vm754_vm11, %vm755_vm10 }
0x1522   :  { %v751_v32 = vsub.f32 1.0, %v750_v31 }
0x1524   :  { %v752_v33 = vmul.f32 %v1418_v30, %v751_v32 }
0x1526   :  { %v753_v34 = vadd.f32 %v1418_v30, %v752_v33 }
0x1528   :  { %v757_v37 = vsel %vm756_vm12, %v1418_v30, %v753_v34 }
0x1529   :  { %v762_v40 = vsel %vm759_vm13, %v761_v38, %v757_v37 }
0x152a   :  { %v768_v43 = vmul.f32 %v766_v42, %v762_v40 }
0x1587   :  { %v771_v39 = vpop.permute.xlu0 %770 }
0x1588   :  { %v773_v41 = vmul.f32 %v771_v39, %v762_v40  ;;  %v50_v39 = vld [vmem:[%s1793_s0 + $0x18] sm:$0xff] }
0x1589   :  { %1296 = vmatmul.msk.f32.gmra.mxu0 %vm56_vm0, %v50_v39 }
0x158a   :  { %775 = vrot.lane.b32.xlu1 %v773_v41, %s1509_s25 }
0x15fc   :  { %v776_v63 = vpop.permute.xlu1 %775 }
0x15fd   :  { %v778_v44 = vadd.f32 %v776_v63, %v768_v43 }
0x15ff   :  { %1419 = vtanh.f32 %v778_v44  ;;  %v836_v4 = vrot.slane %v778_v44, 6  ;;  %v1477_v44 = vld [vmem:[%s1796_s3] ss:$0 sm:$0xff] }
0x1605   :  { %v1420_v45 = vpop.eup %1419 }
0x1606   :  { %781 = vrot.lane.b32.xlu2 %v1420_v45, %s1508_s24  ;;  %v95_v63 = vpop.f32.mrf.mxu0 }
0x1607   :  { %v1754_v45 = vadd.f32 %v1477_v44, %v95_v63 }
0x1660   :  { %v782_v46 = vpop.permute.xlu2 %781 }
0x1661   :  { %v784_v47 = vmul.f32 %v782_v46, %v762_v40 }
0x1663   :  { %v786_v10 = vrot.slane %v784_v47, 2 }
0x1665   :  { %787 = vrot.lane.b32.xlu0 %v786_v10, %s1509_s25 }
0x16d7   :  { %v788_v48 = vpop.permute.xlu0 %787 }
0x16d8   :  { %1316 = vmatmul.msk.f32.vlgmr.msrb.gmra.mxu2 %vm102_vm5, %v788_v48 }
0x175b   :  { %v808_v49 = vpop.f32.mrf.mxu2 }
0x175c   :  { %v812_v50 = vrot.slane %v808_v49, 4 }
0x175e   :  { %v814_v51 = vadd.f32 %v812_v50, %v1721_v58 }
0x1760   :  { %1421 = vtanh.f32 %v814_v51  ;;  %v1317_v53 = vmul.f32 -1.442695, %v814_v51 }
0x1762   :  { %1423 = vpow2.f32 %v1317_v53 }
0x1766   :  { %v1422_v52 = vpop.eup %1421 }
0x1767   :  { %840 = vrot.lane.b32.xlu1 %v1422_v52, %s1508_s24 }
0x1768   :  { %v1424_v54 = vpop.eup %1423 }
0x1769   :  { %v818_v55 = vadd.f32 1.0, %v1424_v54 }
0x176b   :  { %1425 = vrcp.f32 %v818_v55  ;;  %v830_v62 = vand.u32 2147483648, %v818_v55  ;;  %vm824_vm15 = vweird.f32 %v818_v55  ;;  %v828_v1 = vand.u32 2147483647, %v818_v55 }
0x176d   :  { %v831_v2 = vor.u32 1.1754944e-38, %v830_v62  ;;  %vm829_vm2 = vcmp.eq.f32.partialorder %v828_v1, 8.507059e+37 }
0x1771   :  { %v1426_v56 = vpop.eup %1425 }
0x1772   :  { %v820_v57 = vmul.f32 %v1426_v56, %v818_v55  ;;  %vm825_vm14 = vweird.f32 %v1426_v56 }
0x1773   :  { %vm826_vm1 = vmor %vm824_vm15, %vm825_vm14 }
0x1774   :  { %v821_v59 = vsub.f32 1.0, %v820_v57 }
0x1776   :  { %v822_v60 = vmul.f32 %v1426_v56, %v821_v59 }
0x1778   :  { %v823_v61 = vadd.f32 %v1426_v56, %v822_v60 }
0x177a   :  { %v827_v0 = vsel %vm826_vm1, %v1426_v56, %v823_v61 }
0x177b   :  { %v832_v3 = vsel %vm829_vm2, %v831_v2, %v827_v0 }
0x177c   :  { %v838_v8 = vmul.f32 %v836_v4, %v832_v3 }
0x17d9   :  { %v841_v5 = vpop.permute.xlu1 %840 }
0x17da   :  { %v843_v6 = vmul.f32 %v841_v5, %v832_v3 }
0x17dc   :  { %845 = vrot.lane.b32.xlu2 %v843_v6, %s1509_s25 }
0x1836   :  { %v846_v7 = vpop.permute.xlu2 %845 }
0x1837   :  { %v848_v9 = vadd.f32 %v846_v7, %v838_v8 }
0x1839   :  { %1427 = vtanh.f32 %v848_v9  ;;  %v906_v34 = vrot.slane %v848_v9, 6 }
0x183f   :  { %v1428_v11 = vpop.eup %1427 }
0x1840   :  { %851 = vrot.lane.b32.xlu0 %v1428_v11, %s1508_s24 }
0x18b2   :  { %v852_v12 = vpop.permute.xlu0 %851 }
0x18b3   :  { %v854_v13 = vmul.f32 %v852_v12, %v832_v3 }
0x18b5   :  { %v856_v14 = vrot.slane %v854_v13, 4 }
0x18b7   :  { %857 = vrot.lane.b32.xlu1 %v856_v14, %s1509_s25 }
0x1929   :  { %v858_v15 = vpop.permute.xlu1 %857 }
0x192a   :  { %1318 = vmatmul.msk.f32.vlgmr.msrb.gmra.mxu3 %vm102_vm5, %v858_v15 }
0x19ad   :  { %v878_v16 = vpop.f32.mrf.mxu3 }
0x19ae   :  { %v882_v17 = vrot.slane %v878_v16, 2 }
0x19b0   :  { %v884_v18 = vadd.f32 %v882_v17, %v1721_v58 }
0x19b2   :  { %1429 = vtanh.f32 %v884_v18  ;;  %v1319_v20 = vmul.f32 -1.442695, %v884_v18 }
0x19b4   :  { %1431 = vpow2.f32 %v1319_v20 }
0x19b8   :  { %v1430_v19 = vpop.eup %1429 }
0x19b9   :  { %910 = vrot.lane.b32.xlu2 %v1430_v19, %s1508_s24 }
0x19ba   :  { %v1432_v21 = vpop.eup %1431 }
0x19bb   :  { %v888_v22 = vadd.f32 1.0, %v1432_v21 }
0x19bd   :  { %1433 = vrcp.f32 %v888_v22  ;;  %v900_v28 = vand.u32 2147483648, %v888_v22  ;;  %vm894_vm4 = vweird.f32 %v888_v22  ;;  %v898_v29 = vand.u32 2147483647, %v888_v22 }
0x19bf   :  { %v901_v30 = vor.u32 1.1754944e-38, %v900_v28  ;;  %vm899_vm7 = vcmp.eq.f32.partialorder %v898_v29, 8.507059e+37 }
0x19c3   :  { %v1434_v23 = vpop.eup %1433 }
0x19c4   :  { %v890_v24 = vmul.f32 %v1434_v23, %v888_v22  ;;  %vm895_vm3 = vweird.f32 %v1434_v23 }
0x19c5   :  { %vm896_vm6 = vmor %vm894_vm4, %vm895_vm3 }
0x19c6   :  { %v891_v25 = vsub.f32 1.0, %v890_v24 }
0x19c8   :  { %v892_v26 = vmul.f32 %v1434_v23, %v891_v25 }
0x19ca   :  { %v893_v27 = vadd.f32 %v1434_v23, %v892_v26 }
0x19cc   :  { %v897_v58 = vsel %vm896_vm6, %v1434_v23, %v893_v27 }
0x19cd   :  { %v902_v32 = vsel %vm899_vm7, %v901_v30, %v897_v58 }
0x19ce   :  { %v908_v35 = vmul.f32 %v906_v34, %v902_v32 }
0x1a13   :  { %v911_v31 = vpop.permute.xlu2 %910 }
0x1a14   :  { %v913_v33 = vmul.f32 %v911_v31, %v902_v32 }
0x1a16   :  { %915 = vrot.lane.b32.xlu0 %v913_v33, %s1509_s25 }
0x1a88   :  { %v916_v36 = vpop.permute.xlu0 %915 }
0x1a89   :  { %v918_v37 = vadd.f32 %v916_v36, %v908_v35 }
0x1a8b   :  { %1435 = vtanh.f32 %v918_v37  ;;  %v973_v0 = vrot.slane %v918_v37, 6 }
0x1a91   :  { %v1436_v38 = vpop.eup %1435 }
0x1a92   :  { %921 = vrot.lane.b32.xlu1 %v1436_v38, %s1508_s24 }
0x1b04   :  { %v922_v40 = vpop.permute.xlu1 %921 }
0x1b05   :  { %v924_v41 = vmul.f32 %v922_v40, %v902_v32 }
0x1b07   :  { %v926_v42 = vrot.slane %v924_v41, 6 }
0x1b09   :  { %927 = vrot.lane.b32.xlu2 %v926_v42, %s1509_s25 }
0x1b63   :  { %v928_v43 = vpop.permute.xlu2 %927 }
0x1b64   :  { %1320 = vmatmul.msk.f32.vlgmr.msrb.gmra.mxu0 %vm102_vm5, %v928_v43 }
0x1be1   :  { %v948_v46 = vpop.f32.mrf.mxu0 }
0x1be2   :  { %v951_v47 = vadd.f32 %v948_v46, %v1754_v45 }
0x1be4   :  { %1437 = vtanh.f32 %v951_v47  ;;  %v1321_v48 = vmul.f32 -1.442695, %v951_v47 }
0x1be6   :  { %1439 = vpow2.f32 %v1321_v48 }
0x1bea   :  { %v1438_v10 = vpop.eup %1437 }
0x1beb   :  { %977 = vrot.lane.b32.xlu0 %v1438_v10, %s1508_s24 }
0x1bec   :  { %v1440_v49 = vpop.eup %1439 }
0x1bed   :  { %v955_v50 = vadd.f32 1.0, %v1440_v49 }
0x1bef   :  { %1441 = vrcp.f32 %v955_v50  ;;  %v967_v56 = vand.u32 2147483648, %v955_v50  ;;  %vm961_vm8 = vweird.f32 %v955_v50  ;;  %v965_v57 = vand.u32 2147483647, %v955_v50 }
0x1bf1   :  { %v968_v60 = vor.u32 1.1754944e-38, %v967_v56  ;;  %vm966_vm10 = vcmp.eq.f32.partialorder %v965_v57, 8.507059e+37 }
0x1bf5   :  { %v1442_v51 = vpop.eup %1441 }
0x1bf6   :  { %v957_v52 = vmul.f32 %v1442_v51, %v955_v50  ;;  %vm962_vm0 = vweird.f32 %v1442_v51 }
0x1bf7   :  { %vm963_vm9 = vmor %vm961_vm8, %vm962_vm0 }
0x1bf8   :  { %v958_v53 = vsub.f32 1.0, %v957_v52 }
0x1bfa   :  { %v959_v54 = vmul.f32 %v1442_v51, %v958_v53 }
0x1bfc   :  { %v960_v55 = vadd.f32 %v1442_v51, %v959_v54 }
0x1bfe   :  { %v964_v59 = vsel %vm963_vm9, %v1442_v51, %v960_v55 }
0x1bff   :  { %v969_v62 = vsel %vm966_vm10, %v968_v60, %v964_v59 }
0x1c00   :  { %v975_v2 = vmul.f32 %v973_v0, %v969_v62 }
0x1c5d   :  { %v978_v61 = vpop.permute.xlu0 %977 }
0x1c5e   :  { %v980_v1 = vmul.f32 %v978_v61, %v969_v62 }
0x1c60   :  { %982 = vrot.lane.b32.xlu1 %v980_v1, %s1509_s25 }
0x1cd2   :  { %v983_v5 = vpop.permute.xlu1 %982 }
0x1cd3   :  { %v985_v3 = vadd.f32 %v983_v5, %v975_v2 }
0x1cd5   :  { %1443 = vtanh.f32 %v985_v3  ;;  %v1042_v29 = vrot.slane %v985_v3, 6 }
0x1cdb   :  { %v1444_v6 = vpop.eup %1443 }
0x1cdc   :  { %988 = vrot.lane.b32.xlu2 %v1444_v6, %s1508_s24 }
0x1d36   :  { %v989_v4 = vpop.permute.xlu2 %988 }
0x1d37   :  { %v991_v8 = vmul.f32 %v989_v4, %v969_v62 }
0x1d39   :  { %993 = vrot.lane.b32.xlu0 %v991_v8, %s1509_s25 }
0x1dab   :  { %v994_v7 = vpop.permute.xlu0 %993 }
0x1dac   :  { %1322 = vmatmul.msk.f32.vlgmr.msra.gmra.mxu1 %vm102_vm5, %v994_v7 }
0x1e29   :  { %v1014_v9 = vpop.f32.mrf.mxu1 }
0x1e2a   :  { %v1018_v11 = vrot.slane %v1014_v9, 6 }
0x1e2c   :  { %v1020_v12 = vadd.f32 %v1018_v11, %v1754_v45 }
0x1e2e   :  { %1445 = vtanh.f32 %v1020_v12  ;;  %v1323_v14 = vmul.f32 -1.442695, %v1020_v12 }
0x1e30   :  { %1447 = vpow2.f32 %v1323_v14 }
0x1e34   :  { %v1446_v13 = vpop.eup %1445 }
0x1e35   :  { %1046 = vrot.lane.b32.xlu1 %v1446_v13, %s1508_s24 }
0x1e36   :  { %v1448_v15 = vpop.eup %1447 }
0x1e37   :  { %v1024_v16 = vadd.f32 1.0, %v1448_v15 }
0x1e39   :  { %1449 = vrcp.f32 %v1024_v16  ;;  %v1036_v22 = vand.u32 2147483648, %v1024_v16  ;;  %vm1030_vm12 = vweird.f32 %v1024_v16  ;;  %v1034_v23 = vand.u32 2147483647, %v1024_v16 }
0x1e3b   :  { %v1037_v25 = vor.u32 1.1754944e-38, %v1036_v22  ;;  %vm1035_vm14 = vcmp.eq.f32.partialorder %v1034_v23, 8.507059e+37 }
0x1e3f   :  { %v1450_v17 = vpop.eup %1449 }
0x1e40   :  { %v1026_v18 = vmul.f32 %v1450_v17, %v1024_v16  ;;  %vm1031_vm11 = vweird.f32 %v1450_v17 }
0x1e41   :  { %vm1032_vm13 = vmor %vm1030_vm12, %vm1031_vm11  ;;  %vm1277_vm11 = vcmask 254976   ;;  %vm1286_vm12 = vcmask 1024  }
0x1e42   :  { %v1027_v19 = vsub.f32 1.0, %v1026_v18 }
0x1e44   :  { %v1028_v20 = vmul.f32 %v1450_v17, %v1027_v19 }
0x1e46   :  { %v1029_v21 = vadd.f32 %v1450_v17, %v1028_v20 }
0x1e48   :  { %v1033_v24 = vsel %vm1032_vm13, %v1450_v17, %v1029_v21 }
0x1e49   :  { %v1038_v27 = vsel %vm1035_vm14, %v1037_v25, %v1033_v24 }
0x1e4a   :  { %v1044_v58 = vmul.f32 %v1042_v29, %v1038_v27  ;;  %v1201_v29 = vld [vmem:[#allocation3] sm:$0xff] }
0x1ea7   :  { %v1047_v26 = vpop.permute.xlu1 %1046 }
0x1ea8   :  { %v1049_v28 = vmul.f32 %v1047_v26, %v1038_v27  ;;  %v1204_v26 = vld [vmem:[#allocation3 + $0x18] sm:$0xff] }
0x1ea9   :  { %1227 = vmatpush.msra.mxu0 %v1204_v26 }
0x1eaa   :  { %1051 = vrot.lane.b32.xlu2 %v1049_v28, %s1509_s25  ;;  %v1202_v28 = vld [vmem:[#allocation3 + $0x8] sm:$0xff] }
0x1f04   :  { %v1052_v30 = vpop.permute.xlu2 %1051 }
0x1f05   :  { %v1054_v31 = vadd.f32 %v1052_v30, %v1044_v58 }
0x1f07   :  { %1451 = vtanh.f32 %v1054_v31  ;;  %v1112_v55 = vrot.slane %v1054_v31, 6 }
0x1f0d   :  { %v1452_v32 = vpop.eup %1451 }
0x1f0e   :  { %1057 = vrot.lane.b32.xlu0 %v1452_v32, %s1508_s24 }
0x1f80   :  { %v1058_v33 = vpop.permute.xlu0 %1057 }
0x1f81   :  { %v1060_v34 = vmul.f32 %v1058_v33, %v1038_v27  ;;  %v1203_v27 = vld [vmem:[#allocation3 + $0x10] sm:$0xff]  ;;  %v1339_v33 = vld [vmem:[%s1799_s6] ss:$0 sm:$0xff] }
0x1f82   :  { %1228 = vmatpush.msra.mxu0 %v1203_v27 }
0x1f83   :  { %v1062_v35 = vrot.slane %v1060_v34, 2  ;;  %v1338_v34 = vld [vmem:[%s1798_s5] ss:$0 sm:$0xff] }
0x1f84   :  { %1229 = vmatpush.msra.mxu0 %v1202_v28 }
0x1f85   :  { %1063 = vrot.lane.b32.xlu1 %v1062_v35, %s1509_s25 }
0x1f86   :  { %1230 = vmatpush.msra.mxu0 %v1201_v29 }
0x1ff7   :  { %v1064_v36 = vpop.permute.xlu1 %1063 }
0x1ff8   :  { %1324 = vmatmul.msk.f32.vlgmr.msra.gmra.mxu2 %vm102_vm5, %v1064_v36 }
0x207b   :  { %v1084_v37 = vpop.f32.mrf.mxu2 }
0x207c   :  { %v1088_v38 = vrot.slane %v1084_v37, 4 }
0x207e   :  { %v1090_v39 = vadd.f32 %v1088_v38, %v1754_v45 }
0x2080   :  { %1453 = vtanh.f32 %v1090_v39  ;;  %v1325_v41 = vmul.f32 -1.442695, %v1090_v39 }
0x2082   :  { %1455 = vpow2.f32 %v1325_v41 }
0x2086   :  { %v1454_v40 = vpop.eup %1453 }
0x2087   :  { %1116 = vrot.lane.b32.xlu2 %v1454_v40, %s1508_s24 }
0x2088   :  { %v1456_v42 = vpop.eup %1455 }
0x2089   :  { %v1094_v43 = vadd.f32 1.0, %v1456_v42 }
0x208b   :  { %1457 = vrcp.f32 %v1094_v43  ;;  %v1106_v48 = vand.u32 2147483648, %v1094_v43  ;;  %vm1100_vm1 = vweird.f32 %v1094_v43  ;;  %v1104_v49 = vand.u32 2147483647, %v1094_v43 }
0x208d   :  { %v1107_v51 = vor.u32 1.1754944e-38, %v1106_v48  ;;  %vm1105_vm3 = vcmp.eq.f32.partialorder %v1104_v49, 8.507059e+37 }
0x2091   :  { %v1458_v63 = vpop.eup %1457 }
0x2092   :  { %v1096_v44 = vmul.f32 %v1458_v63, %v1094_v43  ;;  %vm1101_vm15 = vweird.f32 %v1458_v63 }
0x2093   :  { %vm1102_vm2 = vmor %vm1100_vm1, %vm1101_vm15 }
0x2094   :  { %v1097_v46 = vsub.f32 1.0, %v1096_v44 }
0x2096   :  { %v1098_v47 = vmul.f32 %v1458_v63, %v1097_v46 }
0x2098   :  { %v1099_v10 = vadd.f32 %v1458_v63, %v1098_v47 }
0x209a   :  { %v1103_v50 = vsel %vm1102_vm2, %v1458_v63, %v1099_v10 }
0x209b   :  { %v1108_v53 = vsel %vm1105_vm3, %v1107_v51, %v1103_v50 }
0x209c   :  { %v1114_v56 = vmul.f32 %v1112_v55, %v1108_v53 }
0x20e1   :  { %v1117_v52 = vpop.permute.xlu2 %1116 }
0x20e2   :  { %v1119_v54 = vmul.f32 %v1117_v52, %v1108_v53 }
0x20e4   :  { %1121 = vrot.lane.b32.xlu0 %v1119_v54, %s1509_s25 }
0x2156   :  { %v1122_v57 = vpop.permute.xlu0 %1121 }
0x2157   :  { %v1124_v59 = vadd.f32 %v1122_v57, %v1114_v56 }
0x2159   :  { %1459 = vtanh.f32 %v1124_v59  ;;  %v1182_v21 = vrot.slane %v1124_v59, 6 }
0x215f   :  { %v1460_v60 = vpop.eup %1459 }
0x2160   :  { %1127 = vrot.lane.b32.xlu1 %v1460_v60, %s1508_s24  ;;  %v1340_v60 = vld [vmem:[#allocation2] ss:$0 sm:$0xff] }
0x21d2   :  { %v1128_v61 = vpop.permute.xlu1 %1127 }
0x21d3   :  { %v1130_v62 = vmul.f32 %v1128_v61, %v1108_v53 }
0x21d5   :  { %v1132_v1 = vrot.slane %v1130_v62, 4 }
0x21d7   :  { %1133 = vrot.lane.b32.xlu2 %v1132_v1, %s1509_s25 }
0x2231   :  { %v1134_v0 = vpop.permute.xlu2 %1133 }
0x2232   :  { %1326 = vmatmul.msk.f32.vlgmr.msra.gmra.mxu3 %vm102_vm5, %v1134_v0 }
0x22b5   :  { %v1154_v2 = vpop.f32.mrf.mxu3 }
0x22b6   :  { %v1158_v5 = vrot.slane %v1154_v2, 2 }
0x22b8   :  { %v1160_v3 = vadd.f32 %v1158_v5, %v1754_v45 }
0x22ba   :  { %1461 = vtanh.f32 %v1160_v3  ;;  %v1327_v4 = vmul.f32 -1.442695, %v1160_v3 }
0x22bc   :  { %1463 = vpow2.f32 %v1327_v4 }
0x22c0   :  { %v1462_v6 = vpop.eup %1461 }
0x22c1   :  { %1186 = vrot.lane.b32.xlu0 %v1462_v6, %s1508_s24 }
0x22c2   :  { %v1464_v8 = vpop.eup %1463 }
0x22c3   :  { %v1164_v7 = vadd.f32 1.0, %v1464_v8 }
0x22c5   :  { %1465 = vrcp.f32 %v1164_v7  ;;  %v1176_v15 = vand.u32 2147483648, %v1164_v7  ;;  %vm1170_vm6 = vweird.f32 %v1164_v7  ;;  %v1174_v16 = vand.u32 2147483647, %v1164_v7 }
0x22c7   :  { %v1177_v17 = vor.u32 1.1754944e-38, %v1176_v15  ;;  %vm1175_vm0 = vcmp.eq.f32.partialorder %v1174_v16, 8.507059e+37 }
0x22cb   :  { %v1466_v9 = vpop.eup %1465 }
0x22cc   :  { %v1166_v11 = vmul.f32 %v1466_v9, %v1164_v7  ;;  %vm1171_vm4 = vweird.f32 %v1466_v9 }
0x22cd   :  { %vm1172_vm7 = vmor %vm1170_vm6, %vm1171_vm4 }
0x22ce   :  { %v1167_v12 = vsub.f32 1.0, %v1166_v11 }
0x22d0   :  { %v1168_v13 = vmul.f32 %v1466_v9, %v1167_v12 }
0x22d2   :  { %v1169_v14 = vadd.f32 %v1466_v9, %v1168_v13 }
0x22d4   :  { %v1173_v45 = vsel %vm1172_vm7, %v1466_v9, %v1169_v14 }
0x22d5   :  { %v1178_v19 = vsel %vm1175_vm0, %v1177_v17, %v1173_v45 }
0x22d6   :  { %v1184_v22 = vmul.f32 %v1182_v21, %v1178_v19 }
0x2333   :  { %v1187_v18 = vpop.permute.xlu0 %1186 }
0x2334   :  { %v1189_v20 = vmul.f32 %v1187_v18, %v1178_v19 }
0x2336   :  { %1191 = vrot.lane.b32.xlu1 %v1189_v20, %s1509_s25 }
0x23a8   :  { %v1192_v23 = vpop.permute.xlu1 %1191 }
0x23a9   :  { %v1194_v24 = vadd.f32 %v1192_v23, %v1184_v22 }
0x23ab   :  { %1467 = vtanh.f32 %v1194_v24 }
0x23b1   :  { %v1468_v25 = vpop.eup %1467 }
0x23b2   :  { %1197 = vrot.lane.b32.xlu2 %v1468_v25, %s1508_s24 }
0x240c   :  { %v1198_v58 = vpop.permute.xlu2 %1197 }
0x240d   :  { %v1200_v30 = vmul.f32 %v1198_v58, %v1178_v19 }
0x240f   :  { %v1210_v31 = vrot.slane %v1200_v30, 6 }
0x2411   :  { %1211 = vrot.lane.b32.xlu0 %v1210_v31, %s1509_s25 }
0x2419   :  { %1269 = vrot.lane.b32.xlu0 %v1339_v33, %s1510_s12 }
0x2483   :  { %v1212_v32 = vpop.permute.xlu0 %1211 }
0x2484   :  { %1328 = vmatmul.msk.f32.vlgmr.msra.gmra.mxu0 %vm102_vm5, %v1212_v32 }
0x248b   :  { %v1270_v54 = vpop.permute.xlu0 %1269 }
0x2501   :  { %v1232_v35 = vpop.f32.mrf.mxu0 }
0x2502   :  { %v1233_v36 = vadd.f32 %v1338_v34, %v1232_v35 }
0x2504   :  { %1469 = vtanh.f32 %v1233_v36  ;;  %v1329_v38 = vmul.f32 -1.442695, %v1233_v36 }
0x2506   :  { %1471 = vpow2.f32 %v1329_v38 }
0x250a   :  { %v1470_v37 = vpop.eup %1469 }
0x250b   :  { %1256 = vrot.lane.b32.xlu1 %v1470_v37, %s1508_s24 }
0x250c   :  { %v1472_v39 = vpop.eup %1471 }
0x250d   :  { %v1238_v40 = vadd.f32 1.0, %v1472_v39 }
0x250f   :  { %1473 = vrcp.f32 %v1238_v40  ;;  %v1250_v46 = vand.u32 2147483648, %v1238_v40  ;;  %vm1244_vm8 = vweird.f32 %v1238_v40  ;;  %v1248_v47 = vand.u32 2147483647, %v1238_v40 }
0x2511   :  { %v1251_v48 = vor.u32 1.1754944e-38, %v1250_v46  ;;  %vm1249_vm10 = vcmp.eq.f32.partialorder %v1248_v47, 8.507059e+37 }
0x2515   :  { %v1474_v41 = vpop.eup %1473 }
0x2516   :  { %v1240_v42 = vmul.f32 %v1474_v41, %v1238_v40  ;;  %vm1245_vm5 = vweird.f32 %v1474_v41 }
0x2517   :  { %vm1246_vm9 = vmor %vm1244_vm8, %vm1245_vm5 }
0x2518   :  { %v1241_v43 = vsub.f32 1.0, %v1240_v42 }
0x251a   :  { %v1242_v63 = vmul.f32 %v1474_v41, %v1241_v43 }
0x251c   :  { %v1243_v44 = vadd.f32 %v1474_v41, %v1242_v63 }
0x251e   :  { %v1247_v10 = vsel %vm1246_vm9, %v1474_v41, %v1243_v44 }
0x251f   :  { %v1252_v50 = vsel %vm1249_vm10, %v1251_v48, %v1247_v10 }
0x257d   :  { %v1257_v49 = vpop.permute.xlu1 %1256 }
0x257e   :  { %v1259_v51 = vmul.f32 %v1257_v49, %v1252_v50 }
0x2580   :  { %1475 = vtanh.f32 %v1259_v51 }
0x2586   :  { %v1476_v52 = vpop.eup %1475 }
0x2587   :  { %1262 = vrot.lane.b32.xlu2 %v1476_v52, %s1510_s12 }
0x25e1   :  { %v1263_v53 = vpop.permute.xlu2 %1262 }
0x25e2   :  { %v1265_v55 = vmul.f32 %v1263_v53, %v1252_v50 }
0x25e4   :  { %v1272_v56 = vmul.f32 %v1270_v54, %v1265_v55 }
0x25e6   :  { %1274 = vrot.lane.b32.xlu1 %v1272_v56, %s1509_s25 }
0x2658   :  { %v1275_v57 = vpop.permute.xlu1 %1274 }
0x2659   :  { %v1278_v59 = vsel %vm1277_vm11, %v1275_v57, 0.0 }
0x265a   :  { %1279 = vadd.xlane.f32.xlu2 %v1278_v59 }
0x26cd   :  { %v1280_v61 = vpop.xlane.xlu2 %1279 }
0x26ce   :  { %v1285_v62 = vadd.f32 %v1340_v60, %v1280_v61 }
0x26d0   :  { %1287 = vst.msk [vmem:[%s1801_s8] sm:$0x3] %vm1286_vm12, %v1285_v62 }
0x26d1   :  { %1292 = vsyncpa [#allocation4], 1 }

</bundles_post_ra>
